<compile_context>
chip_gen: v7x
topology: tpu7x:2x2x1
jax: 0.10.0
libtpu: 0.0.40
codegen_flags: <defaults>
</compile_context>

<pallas_src>
import math
import functools

import jax
import jax.numpy as jnp
from jax import lax
from jax.experimental import pallas as pl
from jax.experimental.pallas import tpu as pltpu


# ----------------------------------------------------------------------------
# Kernel: multi-head attention for a tile of Bt batch elements.
# ----------------------------------------------------------------------------
def mha_kernel(q_ref, k_ref, v_ref,
               wq_ref, bq_ref, wk_ref, bk_ref, wv_ref, bv_ref,
               wo_ref, bo_ref,
               out_ref, *, nheads, d_k, bt, seq):
    f32 = jnp.float32
    bf16 = jnp.bfloat16
    d_model = q_ref.shape[-1]
    m = bt * seq

    # (Bt, S, D) bf16 activations -> (Bt*S, D): leading-dim merge, layout-free.
    q_in = q_ref[...].reshape(m, d_model)
    k_in = k_ref[...].reshape(m, d_model)
    v_in = v_ref[...].reshape(m, d_model)

    # ---- fused Q/K/V projections over all heads and all Bt*S rows ----
    q_all = jnp.dot(q_in, wq_ref[...], preferred_element_type=f32) + bq_ref[...]
    k_all = jnp.dot(k_in, wk_ref[...], preferred_element_type=f32) + bk_ref[...]
    v_all = jnp.dot(v_in, wv_ref[...], preferred_element_type=f32) + bv_ref[...]
    # q_all/k_all/v_all : (Bt*S, nheads*d_k) float32

    inv_sqrt_dk = 1.0 / math.sqrt(d_k)

    # ---- per (batch-in-tile, head) scaled-dot attention, accumulate into the
    #      output projection per head (no lane concat, bounded live ranges) ----
    for b in range(bt):
        rows = slice(b * seq, (b + 1) * seq)
        acc = jnp.zeros((seq, d_model), f32)
        for h in range(nheads):
            cols = slice(h * d_k, (h + 1) * d_k)
            q_h = q_all[rows, cols].astype(bf16)
            k_h = k_all[rows, cols].astype(bf16)
            v_h = v_all[rows, cols].astype(bf16)

            # scores = q_h @ k_h^T (contract lane dims; no materialized transpose)
            s = lax.dot_general(q_h, k_h, (((1,), (1,)), ((), ())),
                                preferred_element_type=f32) * inv_sqrt_dk
            p = jnp.exp(s)                              # exp-then-normalize, as in the module
            p = p * pl.reciprocal(jnp.sum(p, axis=-1, keepdims=True), approx=True)
            # dropout(p) is identity at inference.
            head = jnp.dot(p.astype(bf16), v_h, preferred_element_type=f32)

            # head contribution to the output projection (Wo rows for head h)
            acc = acc + jnp.dot(head.astype(bf16), wo_ref[cols, :],
                                preferred_element_type=f32)

        out_ref[b] = (acc + bo_ref[...]).astype(out_ref.dtype)


# ----------------------------------------------------------------------------
# Wrapper: one pallas_call, grid over batch tiles ("parallel" -> both TCs).
# ----------------------------------------------------------------------------
def _pick_batch_tile(B, S, D):
    """Largest divisor of B that keeps >= 2 grid steps (megacore) and a
    modest activation tile."""
    if B == 1:
        return 1
    budget = max(1, (1 << 20) // max(1, S * D))        # cap tile to ~1M elems
    for bt in range(min(B // 2, budget), 0, -1):
        if B % bt == 0:
            return bt
    return 1


def multi_head_attention(q, k, v, p, *, nheads, d_k):
    """q, k, v: (B, S, d_model) float32. Returns (B, S, d_model) float32."""
    B, S, D = q.shape
    hd = nheads * d_k
    bt = _pick_batch_tile(B, S, D)
    bf16 = jnp.bfloat16

    # bf16 activations / weights into the kernel (halves HBM->VMEM traffic);
    # biases stay f32 (added after f32 accumulation).
    q_b, k_b, v_b = q.astype(bf16), k.astype(bf16), v.astype(bf16)
    wq, wk, wv, wo = (p["wq"].astype(bf16), p["wk"].astype(bf16),
                      p["wv"].astype(bf16), p["wo"].astype(bf16))
    bq, bk, bv, bo = (p["bq"].astype(jnp.float32), p["bk"].astype(jnp.float32),
                      p["bv"].astype(jnp.float32), p["bo"].astype(jnp.float32))

    act_spec = pl.BlockSpec((bt, S, D), lambda i: (i, 0, 0))
    w_spec = lambda shape: pl.BlockSpec(shape, lambda i: (0, 0))

    in_specs = [
        act_spec, act_spec, act_spec,                   # q, k, v
        w_spec((D, hd)), w_spec((1, hd)),               # Wq (stacked heads), bq
        w_spec((D, hd)), w_spec((1, hd)),               # Wk, bk
        w_spec((D, hd)), w_spec((1, hd)),               # Wv, bv
        w_spec((hd, D)), w_spec((1, D)),                # Wo, bo
    ]

    flops = 2 * B * S * (3 * D * hd + 2 * S * hd + hd * D)
    transcendentals = B * nheads * S * S
    bytes_accessed = (3 * B * S * D * 2 + B * S * D * 4
                      + 2 * (3 * D * hd + hd * D) + 4 * (3 * hd + D))

    kernel = functools.partial(mha_kernel, nheads=nheads, d_k=d_k, bt=bt, seq=S)
    return pl.pallas_call(
        kernel,
        out_shape=jax.ShapeDtypeStruct((B, S, D), jnp.float32),
        grid_spec=pltpu.PrefetchScalarGridSpec(
            num_scalar_prefetch=0,
            grid=(B // bt,),
            in_specs=in_specs,
            out_specs=pl.BlockSpec((bt, S, D), lambda i: (i, 0, 0)),
        ),
        compiler_params=pltpu.CompilerParams(
            dimension_semantics=("parallel",)),
        cost_estimate=pl.CostEstimate(flops=flops,
                                      transcendentals=transcendentals,
                                      bytes_accessed=bytes_accessed),
    )(q_b, k_b, v_b, wq, bq, wk, bk, wv, bv, wo, bo)


# ----------------------------------------------------------------------------
# Deterministic parameter init (PyTorch nn.Linear-style uniform bounds),
# stored pre-stacked across heads in math layout (in_features, out_features).
# ----------------------------------------------------------------------------
def init_params(key, d_model, d_k, nheads):
    hd = nheads * d_k
    ks = jax.random.split(key, 8)

    def u(k, fan_in, shape):
        bound = 1.0 / math.sqrt(fan_in)
        return jax.random.uniform(k, shape, jnp.float32, -bound, bound)

    return dict(
        wq=u(ks[0], d_model, (d_model, hd)), bq=u(ks[1], d_model, (1, hd)),
        wk=u(ks[2], d_model, (d_model, hd)), bk=u(ks[3], d_model, (1, hd)),
        wv=u(ks[4], d_model, (d_model, hd)), bv=u(ks[5], d_model, (1, hd)),
        wo=u(ks[6], hd, (hd, d_model)),      bo=u(ks[7], hd, (1, d_model)),
    )


# ----------------------------------------------------------------------------
# Pure-JAX reference (same math, f32) for numerical sanity check.
# ----------------------------------------------------------------------------
def reference_mha(q, k, v, p, *, nheads, d_k):
    heads = []
    for h in range(nheads):
        sl = slice(h * d_k, (h + 1) * d_k)
        qh = q @ p["wq"][:, sl] + p["bq"][0, sl]
        kh = k @ p["wk"][:, sl] + p["bk"][0, sl]
        vh = v @ p["wv"][:, sl] + p["bv"][0, sl]
        s = jnp.einsum("bid,bjd->bij", qh, kh) / math.sqrt(d_k)
        s = jnp.exp(s)
        s = s / jnp.sum(s, -1, keepdims=True)
        heads.append(jnp.einsum("bij,bjd->bid", s, vh))
    return jnp.concatenate(heads, -1) @ p["wo"] + p["bo"][0]


if __name__ == "__main__":
    B, S = 2, 8
    d_model, d_k, nheads = 32, 8, 8

    key = jax.random.PRNGKey(0)
    kq, kk, kv, kp = jax.random.split(key, 4)
    q = jax.random.normal(kq, (B, S, d_model), jnp.float32)
    k = jax.random.normal(kk, (B, S, d_model), jnp.float32)
    v = jax.random.normal(kv, (B, S, d_model), jnp.float32)

    params = init_params(kp, d_model, d_k, nheads)
    # The kernel rounds matmul operands (activations + weights) to bf16; make the
    # reference use the identical bf16-representable weights in f32 so the check
    # isolates kernel error.
    rparams = {n: (w.astype(jnp.bfloat16).astype(jnp.float32)
                   if n.startswith("w") else w) for n, w in params.items()}

    out = multi_head_attention(q, k, v, params, nheads=nheads, d_k=d_k)
    out = jax.block_until_ready(out)

    ref = reference_mha(q, k, v, rparams, nheads=nheads, d_k=d_k)
    assert out.shape == (B, S, d_model)
    # Tolerance covers bf16 operand rounding (f32 accumulation) and the
    # approximate EUP reciprocal in the softmax denominator.
    assert jnp.allclose(out, ref, atol=2e-2, rtol=2e-2), \
        float(jnp.max(jnp.abs(out - ref)))

    print("KERNEL_OK")
</pallas_src>

<mosaic_0001>
module attributes {stable_mosaic.version = 11 : i64} {
  func.func @mha_kernel(%arg0: i32, %arg1: memref<1x8x32xbf16, #tpu.memory_space<vmem>>, %arg2: memref<1x8x32xbf16, #tpu.memory_space<vmem>>, %arg3: memref<1x8x32xbf16, #tpu.memory_space<vmem>>, %arg4: memref<32x64xbf16, #tpu.memory_space<vmem>>, %arg5: memref<1x64xf32, #tpu.memory_space<vmem>>, %arg6: memref<32x64xbf16, #tpu.memory_space<vmem>>, %arg7: memref<1x64xf32, #tpu.memory_space<vmem>>, %arg8: memref<32x64xbf16, #tpu.memory_space<vmem>>, %arg9: memref<1x64xf32, #tpu.memory_space<vmem>>, %arg10: memref<64x32xbf16, #tpu.memory_space<vmem>>, %arg11: memref<1x32xf32, #tpu.memory_space<vmem>>, %arg12: memref<1x8x32xf32, #tpu.memory_space<vmem>>) attributes {dimension_semantics = [#tpu.dimension_semantics<parallel>], iteration_bounds = array<i64: 2>, scalar_prefetch = 0 : i64, scratch_operands = 0 : i64, tpu.core_type = #tpu.core_type<tc>, window_params = [{transform_indices = @transform_0, window_bounds = array<i64: 1, 8, 32>}, {transform_indices = @transform_1, window_bounds = array<i64: 1, 8, 32>}, {transform_indices = @transform_2, window_bounds = array<i64: 1, 8, 32>}, {pipeline_mode = #tpu.pipeline_mode<synchronous>, transform_indices = @transform_3, window_bounds = array<i64: 32, 64>}, {pipeline_mode = #tpu.pipeline_mode<synchronous>, transform_indices = @transform_4, window_bounds = array<i64: 1, 64>}, {pipeline_mode = #tpu.pipeline_mode<synchronous>, transform_indices = @transform_5, window_bounds = array<i64: 32, 64>}, {pipeline_mode = #tpu.pipeline_mode<synchronous>, transform_indices = @transform_6, window_bounds = array<i64: 1, 64>}, {pipeline_mode = #tpu.pipeline_mode<synchronous>, transform_indices = @transform_7, window_bounds = array<i64: 32, 64>}, {pipeline_mode = #tpu.pipeline_mode<synchronous>, transform_indices = @transform_8, window_bounds = array<i64: 1, 64>}, {pipeline_mode = #tpu.pipeline_mode<synchronous>, transform_indices = @transform_9, window_bounds = array<i64: 64, 32>}, {pipeline_mode = #tpu.pipeline_mode<synchronous>, transform_indices = @transform_10, window_bounds = array<i64: 1, 32>}, {transform_indices = @transform_11, window_bounds = array<i64: 1, 8, 32>}]} {
    %c0 = arith.constant 0 : index
    %c0_0 = arith.constant 0 : index
    %c0_1 = arith.constant 0 : index
    %0 = vector.load %arg1[%c0, %c0_0, %c0_1] : memref<1x8x32xbf16, #tpu.memory_space<vmem>>, vector<1x8x32xbf16>
    %1 = vector.shape_cast %0 : vector<1x8x32xbf16> to vector<8x32xbf16>
    %c0_2 = arith.constant 0 : index
    %c0_3 = arith.constant 0 : index
    %c0_4 = arith.constant 0 : index
    %2 = vector.load %arg2[%c0_2, %c0_3, %c0_4] : memref<1x8x32xbf16, #tpu.memory_space<vmem>>, vector<1x8x32xbf16>
    %3 = vector.shape_cast %2 : vector<1x8x32xbf16> to vector<8x32xbf16>
    %c0_5 = arith.constant 0 : index
    %c0_6 = arith.constant 0 : index
    %c0_7 = arith.constant 0 : index
    %4 = vector.load %arg3[%c0_5, %c0_6, %c0_7] : memref<1x8x32xbf16, #tpu.memory_space<vmem>>, vector<1x8x32xbf16>
    %5 = vector.shape_cast %4 : vector<1x8x32xbf16> to vector<8x32xbf16>
    %c0_8 = arith.constant 0 : index
    %c0_9 = arith.constant 0 : index
    %6 = vector.load %arg4[%c0_8, %c0_9] : memref<32x64xbf16, #tpu.memory_space<vmem>>, vector<32x64xbf16>
    %cst = arith.constant dense<0.000000e+00> : vector<8x64xf32>
    %7 = tpu.matmul %1, %6, %cst {dimension_numbers = #tpu.dot_dimension_numbers<[1], [0], [0], [1], [0, 0, 1, 1], [], []>} : vector<8x32xbf16>, vector<32x64xbf16>, vector<8x64xf32> -> vector<8x64xf32>
    %c0_10 = arith.constant 0 : index
    %c0_11 = arith.constant 0 : index
    %8 = vector.load %arg5[%c0_10, %c0_11] : memref<1x64xf32, #tpu.memory_space<vmem>>, vector<1x64xf32>
    %9 = vector.broadcast %8 : vector<1x64xf32> to vector<8x64xf32>
    %10 = arith.addf %7, %9 : vector<8x64xf32>
    %c0_12 = arith.constant 0 : index
    %c0_13 = arith.constant 0 : index
    %11 = vector.load %arg6[%c0_12, %c0_13] : memref<32x64xbf16, #tpu.memory_space<vmem>>, vector<32x64xbf16>
    %cst_14 = arith.constant dense<0.000000e+00> : vector<8x64xf32>
    %12 = tpu.matmul %3, %11, %cst_14 {dimension_numbers = #tpu.dot_dimension_numbers<[1], [0], [0], [1], [0, 0, 1, 1], [], []>} : vector<8x32xbf16>, vector<32x64xbf16>, vector<8x64xf32> -> vector<8x64xf32>
    %c0_15 = arith.constant 0 : index
    %c0_16 = arith.constant 0 : index
    %13 = vector.load %arg7[%c0_15, %c0_16] : memref<1x64xf32, #tpu.memory_space<vmem>>, vector<1x64xf32>
    %14 = vector.broadcast %13 : vector<1x64xf32> to vector<8x64xf32>
    %15 = arith.addf %12, %14 : vector<8x64xf32>
    %c0_17 = arith.constant 0 : index
    %c0_18 = arith.constant 0 : index
    %16 = vector.load %arg8[%c0_17, %c0_18] : memref<32x64xbf16, #tpu.memory_space<vmem>>, vector<32x64xbf16>
    %cst_19 = arith.constant dense<0.000000e+00> : vector<8x64xf32>
    %17 = tpu.matmul %5, %16, %cst_19 {dimension_numbers = #tpu.dot_dimension_numbers<[1], [0], [0], [1], [0, 0, 1, 1], [], []>} : vector<8x32xbf16>, vector<32x64xbf16>, vector<8x64xf32> -> vector<8x64xf32>
    %c0_20 = arith.constant 0 : index
    %c0_21 = arith.constant 0 : index
    %18 = vector.load %arg9[%c0_20, %c0_21] : memref<1x64xf32, #tpu.memory_space<vmem>>, vector<1x64xf32>
    %19 = vector.broadcast %18 : vector<1x64xf32> to vector<8x64xf32>
    %20 = arith.addf %17, %19 : vector<8x64xf32>
    %cst_22 = arith.constant 0.000000e+00 : f32
    %21 = vector.broadcast %cst_22 : f32 to vector<8x32xf32>
    %22 = vector.extract_strided_slice %10 {offsets = [0, 0], sizes = [8, 8], strides = [1, 1]} : vector<8x64xf32> to vector<8x8xf32>
    %23 = arith.truncf %22 : vector<8x8xf32> to vector<8x8xbf16>
    %24 = vector.extract_strided_slice %15 {offsets = [0, 0], sizes = [8, 8], strides = [1, 1]} : vector<8x64xf32> to vector<8x8xf32>
    %25 = arith.truncf %24 : vector<8x8xf32> to vector<8x8xbf16>
    %26 = vector.extract_strided_slice %20 {offsets = [0, 0], sizes = [8, 8], strides = [1, 1]} : vector<8x64xf32> to vector<8x8xf32>
    %27 = arith.truncf %26 : vector<8x8xf32> to vector<8x8xbf16>
    %cst_23 = arith.constant dense<0.000000e+00> : vector<8x8xf32>
    %28 = tpu.matmul %23, %25, %cst_23 {dimension_numbers = #tpu.dot_dimension_numbers<[1], [1], [0], [0], [0, 0, 1, 0], [], []>} : vector<8x8xbf16>, vector<8x8xbf16>, vector<8x8xf32> -> vector<8x8xf32>
    %cst_24 = arith.constant 0.353553385 : f32
    %29 = vector.broadcast %cst_24 : f32 to vector<8x8xf32>
    %30 = arith.mulf %28, %29 : vector<8x8xf32>
    %31 = math.exp %30 : vector<8x8xf32>
    %cst_25 = arith.constant dense<0.000000e+00> : vector<8xf32>
    %32 = vector.multi_reduction <add>, %31, %cst_25 [1] : vector<8x8xf32> to vector<8xf32>
    %33 = vector.shape_cast %32 : vector<8xf32> to vector<8x1xf32>
    %34 = tpu.reciprocal %33 {approx = true} : vector<8x1xf32> -> vector<8x1xf32>
    %35 = vector.broadcast %34 : vector<8x1xf32> to vector<8x8xf32>
    %36 = arith.mulf %31, %35 : vector<8x8xf32>
    %37 = arith.truncf %36 : vector<8x8xf32> to vector<8x8xbf16>
    %cst_26 = arith.constant dense<0.000000e+00> : vector<8x8xf32>
    %38 = tpu.matmul %37, %27, %cst_26 {dimension_numbers = #tpu.dot_dimension_numbers<[1], [0], [0], [1], [0, 0, 1, 1], [], []>} : vector<8x8xbf16>, vector<8x8xbf16>, vector<8x8xf32> -> vector<8x8xf32>
    %39 = arith.truncf %38 : vector<8x8xf32> to vector<8x8xbf16>
    %c0_27 = arith.constant 0 : index
    %c0_28 = arith.constant 0 : index
    %40 = vector.load %arg10[%c0_27, %c0_28] : memref<64x32xbf16, #tpu.memory_space<vmem>>, vector<8x32xbf16>
    %cst_29 = arith.constant dense<0.000000e+00> : vector<8x32xf32>
    %41 = tpu.matmul %39, %40, %cst_29 {dimension_numbers = #tpu.dot_dimension_numbers<[1], [0], [0], [1], [0, 0, 1, 1], [], []>} : vector<8x8xbf16>, vector<8x32xbf16>, vector<8x32xf32> -> vector<8x32xf32>
    %42 = arith.addf %21, %41 : vector<8x32xf32>
    %43 = vector.extract_strided_slice %10 {offsets = [0, 8], sizes = [8, 8], strides = [1, 1]} : vector<8x64xf32> to vector<8x8xf32>
    %44 = arith.truncf %43 : vector<8x8xf32> to vector<8x8xbf16>
    %45 = vector.extract_strided_slice %15 {offsets = [0, 8], sizes = [8, 8], strides = [1, 1]} : vector<8x64xf32> to vector<8x8xf32>
    %46 = arith.truncf %45 : vector<8x8xf32> to vector<8x8xbf16>
    %47 = vector.extract_strided_slice %20 {offsets = [0, 8], sizes = [8, 8], strides = [1, 1]} : vector<8x64xf32> to vector<8x8xf32>
    %48 = arith.truncf %47 : vector<8x8xf32> to vector<8x8xbf16>
    %cst_30 = arith.constant dense<0.000000e+00> : vector<8x8xf32>
    %49 = tpu.matmul %44, %46, %cst_30 {dimension_numbers = #tpu.dot_dimension_numbers<[1], [1], [0], [0], [0, 0, 1, 0], [], []>} : vector<8x8xbf16>, vector<8x8xbf16>, vector<8x8xf32> -> vector<8x8xf32>
    %cst_31 = arith.constant 0.353553385 : f32
    %50 = vector.broadcast %cst_31 : f32 to vector<8x8xf32>
    %51 = arith.mulf %49, %50 : vector<8x8xf32>
    %52 = math.exp %51 : vector<8x8xf32>
    %cst_32 = arith.constant dense<0.000000e+00> : vector<8xf32>
    %53 = vector.multi_reduction <add>, %52, %cst_32 [1] : vector<8x8xf32> to vector<8xf32>
    %54 = vector.shape_cast %53 : vector<8xf32> to vector<8x1xf32>
    %55 = tpu.reciprocal %54 {approx = true} : vector<8x1xf32> -> vector<8x1xf32>
    %56 = vector.broadcast %55 : vector<8x1xf32> to vector<8x8xf32>
    %57 = arith.mulf %52, %56 : vector<8x8xf32>
    %58 = arith.truncf %57 : vector<8x8xf32> to vector<8x8xbf16>
    %cst_33 = arith.constant dense<0.000000e+00> : vector<8x8xf32>
    %59 = tpu.matmul %58, %48, %cst_33 {dimension_numbers = #tpu.dot_dimension_numbers<[1], [0], [0], [1], [0, 0, 1, 1], [], []>} : vector<8x8xbf16>, vector<8x8xbf16>, vector<8x8xf32> -> vector<8x8xf32>
    %60 = arith.truncf %59 : vector<8x8xf32> to vector<8x8xbf16>
    %c8 = arith.constant 8 : index
    %c0_34 = arith.constant 0 : index
    %61 = vector.load %arg10[%c8, %c0_34] : memref<64x32xbf16, #tpu.memory_space<vmem>>, vector<8x32xbf16>
    %cst_35 = arith.constant dense<0.000000e+00> : vector<8x32xf32>
    %62 = tpu.matmul %60, %61, %cst_35 {dimension_numbers = #tpu.dot_dimension_numbers<[1], [0], [0], [1], [0, 0, 1, 1], [], []>} : vector<8x8xbf16>, vector<8x32xbf16>, vector<8x32xf32> -> vector<8x32xf32>
    %63 = arith.addf %42, %62 : vector<8x32xf32>
    %64 = vector.extract_strided_slice %10 {offsets = [0, 16], sizes = [8, 8], strides = [1, 1]} : vector<8x64xf32> to vector<8x8xf32>
    %65 = arith.truncf %64 : vector<8x8xf32> to vector<8x8xbf16>
    %66 = vector.extract_strided_slice %15 {offsets = [0, 16], sizes = [8, 8], strides = [1, 1]} : vector<8x64xf32> to vector<8x8xf32>
    %67 = arith.truncf %66 : vector<8x8xf32> to vector<8x8xbf16>
    %68 = vector.extract_strided_slice %20 {offsets = [0, 16], sizes = [8, 8], strides = [1, 1]} : vector<8x64xf32> to vector<8x8xf32>
    %69 = arith.truncf %68 : vector<8x8xf32> to vector<8x8xbf16>
    %cst_36 = arith.constant dense<0.000000e+00> : vector<8x8xf32>
    %70 = tpu.matmul %65, %67, %cst_36 {dimension_numbers = #tpu.dot_dimension_numbers<[1], [1], [0], [0], [0, 0, 1, 0], [], []>} : vector<8x8xbf16>, vector<8x8xbf16>, vector<8x8xf32> -> vector<8x8xf32>
    %cst_37 = arith.constant 0.353553385 : f32
    %71 = vector.broadcast %cst_37 : f32 to vector<8x8xf32>
    %72 = arith.mulf %70, %71 : vector<8x8xf32>
    %73 = math.exp %72 : vector<8x8xf32>
    %cst_38 = arith.constant dense<0.000000e+00> : vector<8xf32>
    %74 = vector.multi_reduction <add>, %73, %cst_38 [1] : vector<8x8xf32> to vector<8xf32>
    %75 = vector.shape_cast %74 : vector<8xf32> to vector<8x1xf32>
    %76 = tpu.reciprocal %75 {approx = true} : vector<8x1xf32> -> vector<8x1xf32>
    %77 = vector.broadcast %76 : vector<8x1xf32> to vector<8x8xf32>
    %78 = arith.mulf %73, %77 : vector<8x8xf32>
    %79 = arith.truncf %78 : vector<8x8xf32> to vector<8x8xbf16>
    %cst_39 = arith.constant dense<0.000000e+00> : vector<8x8xf32>
    %80 = tpu.matmul %79, %69, %cst_39 {dimension_numbers = #tpu.dot_dimension_numbers<[1], [0], [0], [1], [0, 0, 1, 1], [], []>} : vector<8x8xbf16>, vector<8x8xbf16>, vector<8x8xf32> -> vector<8x8xf32>
    %81 = arith.truncf %80 : vector<8x8xf32> to vector<8x8xbf16>
    %c16 = arith.constant 16 : index
    %c0_40 = arith.constant 0 : index
    %82 = vector.load %arg10[%c16, %c0_40] : memref<64x32xbf16, #tpu.memory_space<vmem>>, vector<8x32xbf16>
    %cst_41 = arith.constant dense<0.000000e+00> : vector<8x32xf32>
    %83 = tpu.matmul %81, %82, %cst_41 {dimension_numbers = #tpu.dot_dimension_numbers<[1], [0], [0], [1], [0, 0, 1, 1], [], []>} : vector<8x8xbf16>, vector<8x32xbf16>, vector<8x32xf32> -> vector<8x32xf32>
    %84 = arith.addf %63, %83 : vector<8x32xf32>
    %85 = vector.extract_strided_slice %10 {offsets = [0, 24], sizes = [8, 8], strides = [1, 1]} : vector<8x64xf32> to vector<8x8xf32>
    %86 = arith.truncf %85 : vector<8x8xf32> to vector<8x8xbf16>
    %87 = vector.extract_strided_slice %15 {offsets = [0, 24], sizes = [8, 8], strides = [1, 1]} : vector<8x64xf32> to vector<8x8xf32>
    %88 = arith.truncf %87 : vector<8x8xf32> to vector<8x8xbf16>
    %89 = vector.extract_strided_slice %20 {offsets = [0, 24], sizes = [8, 8], strides = [1, 1]} : vector<8x64xf32> to vector<8x8xf32>
    %90 = arith.truncf %89 : vector<8x8xf32> to vector<8x8xbf16>
    %cst_42 = arith.constant dense<0.000000e+00> : vector<8x8xf32>
    %91 = tpu.matmul %86, %88, %cst_42 {dimension_numbers = #tpu.dot_dimension_numbers<[1], [1], [0], [0], [0, 0, 1, 0], [], []>} : vector<8x8xbf16>, vector<8x8xbf16>, vector<8x8xf32> -> vector<8x8xf32>
    %cst_43 = arith.constant 0.353553385 : f32
    %92 = vector.broadcast %cst_43 : f32 to vector<8x8xf32>
    %93 = arith.mulf %91, %92 : vector<8x8xf32>
    %94 = math.exp %93 : vector<8x8xf32>
    %cst_44 = arith.constant dense<0.000000e+00> : vector<8xf32>
    %95 = vector.multi_reduction <add>, %94, %cst_44 [1] : vector<8x8xf32> to vector<8xf32>
    %96 = vector.shape_cast %95 : vector<8xf32> to vector<8x1xf32>
    %97 = tpu.reciprocal %96 {approx = true} : vector<8x1xf32> -> vector<8x1xf32>
    %98 = vector.broadcast %97 : vector<8x1xf32> to vector<8x8xf32>
    %99 = arith.mulf %94, %98 : vector<8x8xf32>
    %100 = arith.truncf %99 : vector<8x8xf32> to vector<8x8xbf16>
    %cst_45 = arith.constant dense<0.000000e+00> : vector<8x8xf32>
    %101 = tpu.matmul %100, %90, %cst_45 {dimension_numbers = #tpu.dot_dimension_numbers<[1], [0], [0], [1], [0, 0, 1, 1], [], []>} : vector<8x8xbf16>, vector<8x8xbf16>, vector<8x8xf32> -> vector<8x8xf32>
    %102 = arith.truncf %101 : vector<8x8xf32> to vector<8x8xbf16>
    %c24 = arith.constant 24 : index
    %c0_46 = arith.constant 0 : index
    %103 = vector.load %arg10[%c24, %c0_46] : memref<64x32xbf16, #tpu.memory_space<vmem>>, vector<8x32xbf16>
    %cst_47 = arith.constant dense<0.000000e+00> : vector<8x32xf32>
    %104 = tpu.matmul %102, %103, %cst_47 {dimension_numbers = #tpu.dot_dimension_numbers<[1], [0], [0], [1], [0, 0, 1, 1], [], []>} : vector<8x8xbf16>, vector<8x32xbf16>, vector<8x32xf32> -> vector<8x32xf32>
    %105 = arith.addf %84, %104 : vector<8x32xf32>
    %106 = vector.extract_strided_slice %10 {offsets = [0, 32], sizes = [8, 8], strides = [1, 1]} : vector<8x64xf32> to vector<8x8xf32>
    %107 = arith.truncf %106 : vector<8x8xf32> to vector<8x8xbf16>
    %108 = vector.extract_strided_slice %15 {offsets = [0, 32], sizes = [8, 8], strides = [1, 1]} : vector<8x64xf32> to vector<8x8xf32>
    %109 = arith.truncf %108 : vector<8x8xf32> to vector<8x8xbf16>
    %110 = vector.extract_strided_slice %20 {offsets = [0, 32], sizes = [8, 8], strides = [1, 1]} : vector<8x64xf32> to vector<8x8xf32>
    %111 = arith.truncf %110 : vector<8x8xf32> to vector<8x8xbf16>
    %cst_48 = arith.constant dense<0.000000e+00> : vector<8x8xf32>
    %112 = tpu.matmul %107, %109, %cst_48 {dimension_numbers = #tpu.dot_dimension_numbers<[1], [1], [0], [0], [0, 0, 1, 0], [], []>} : vector<8x8xbf16>, vector<8x8xbf16>, vector<8x8xf32> -> vector<8x8xf32>
    %cst_49 = arith.constant 0.353553385 : f32
    %113 = vector.broadcast %cst_49 : f32 to vector<8x8xf32>
    %114 = arith.mulf %112, %113 : vector<8x8xf32>
    %115 = math.exp %114 : vector<8x8xf32>
    %cst_50 = arith.constant dense<0.000000e+00> : vector<8xf32>
    %116 = vector.multi_reduction <add>, %115, %cst_50 [1] : vector<8x8xf32> to vector<8xf32>
    %117 = vector.shape_cast %116 : vector<8xf32> to vector<8x1xf32>
    %118 = tpu.reciprocal %117 {approx = true} : vector<8x1xf32> -> vector<8x1xf32>
    %119 = vector.broadcast %118 : vector<8x1xf32> to vector<8x8xf32>
    %120 = arith.mulf %115, %119 : vector<8x8xf32>
    %121 = arith.truncf %120 : vector<8x8xf32> to vector<8x8xbf16>
    %cst_51 = arith.constant dense<0.000000e+00> : vector<8x8xf32>
    %122 = tpu.matmul %121, %111, %cst_51 {dimension_numbers = #tpu.dot_dimension_numbers<[1], [0], [0], [1], [0, 0, 1, 1], [], []>} : vector<8x8xbf16>, vector<8x8xbf16>, vector<8x8xf32> -> vector<8x8xf32>
    %123 = arith.truncf %122 : vector<8x8xf32> to vector<8x8xbf16>
    %c32 = arith.constant 32 : index
    %c0_52 = arith.constant 0 : index
    %124 = vector.load %arg10[%c32, %c0_52] : memref<64x32xbf16, #tpu.memory_space<vmem>>, vector<8x32xbf16>
    %cst_53 = arith.constant dense<0.000000e+00> : vector<8x32xf32>
    %125 = tpu.matmul %123, %124, %cst_53 {dimension_numbers = #tpu.dot_dimension_numbers<[1], [0], [0], [1], [0, 0, 1, 1], [], []>} : vector<8x8xbf16>, vector<8x32xbf16>, vector<8x32xf32> -> vector<8x32xf32>
    %126 = arith.addf %105, %125 : vector<8x32xf32>
    %127 = vector.extract_strided_slice %10 {offsets = [0, 40], sizes = [8, 8], strides = [1, 1]} : vector<8x64xf32> to vector<8x8xf32>
    %128 = arith.truncf %127 : vector<8x8xf32> to vector<8x8xbf16>
    %129 = vector.extract_strided_slice %15 {offsets = [0, 40], sizes = [8, 8], strides = [1, 1]} : vector<8x64xf32> to vector<8x8xf32>
    %130 = arith.truncf %129 : vector<8x8xf32> to vector<8x8xbf16>
    %131 = vector.extract_strided_slice %20 {offsets = [0, 40], sizes = [8, 8], strides = [1, 1]} : vector<8x64xf32> to vector<8x8xf32>
    %132 = arith.truncf %131 : vector<8x8xf32> to vector<8x8xbf16>
    %cst_54 = arith.constant dense<0.000000e+00> : vector<8x8xf32>
    %133 = tpu.matmul %128, %130, %cst_54 {dimension_numbers = #tpu.dot_dimension_numbers<[1], [1], [0], [0], [0, 0, 1, 0], [], []>} : vector<8x8xbf16>, vector<8x8xbf16>, vector<8x8xf32> -> vector<8x8xf32>
    %cst_55 = arith.constant 0.353553385 : f32
    %134 = vector.broadcast %cst_55 : f32 to vector<8x8xf32>
    %135 = arith.mulf %133, %134 : vector<8x8xf32>
    %136 = math.exp %135 : vector<8x8xf32>
    %cst_56 = arith.constant dense<0.000000e+00> : vector<8xf32>
    %137 = vector.multi_reduction <add>, %136, %cst_56 [1] : vector<8x8xf32> to vector<8xf32>
    %138 = vector.shape_cast %137 : vector<8xf32> to vector<8x1xf32>
    %139 = tpu.reciprocal %138 {approx = true} : vector<8x1xf32> -> vector<8x1xf32>
    %140 = vector.broadcast %139 : vector<8x1xf32> to vector<8x8xf32>
    %141 = arith.mulf %136, %140 : vector<8x8xf32>
    %142 = arith.truncf %141 : vector<8x8xf32> to vector<8x8xbf16>
    %cst_57 = arith.constant dense<0.000000e+00> : vector<8x8xf32>
    %143 = tpu.matmul %142, %132, %cst_57 {dimension_numbers = #tpu.dot_dimension_numbers<[1], [0], [0], [1], [0, 0, 1, 1], [], []>} : vector<8x8xbf16>, vector<8x8xbf16>, vector<8x8xf32> -> vector<8x8xf32>
    %144 = arith.truncf %143 : vector<8x8xf32> to vector<8x8xbf16>
    %c40 = arith.constant 40 : index
    %c0_58 = arith.constant 0 : index
    %145 = vector.load %arg10[%c40, %c0_58] : memref<64x32xbf16, #tpu.memory_space<vmem>>, vector<8x32xbf16>
    %cst_59 = arith.constant dense<0.000000e+00> : vector<8x32xf32>
    %146 = tpu.matmul %144, %145, %cst_59 {dimension_numbers = #tpu.dot_dimension_numbers<[1], [0], [0], [1], [0, 0, 1, 1], [], []>} : vector<8x8xbf16>, vector<8x32xbf16>, vector<8x32xf32> -> vector<8x32xf32>
    %147 = arith.addf %126, %146 : vector<8x32xf32>
    %148 = vector.extract_strided_slice %10 {offsets = [0, 48], sizes = [8, 8], strides = [1, 1]} : vector<8x64xf32> to vector<8x8xf32>
    %149 = arith.truncf %148 : vector<8x8xf32> to vector<8x8xbf16>
    %150 = vector.extract_strided_slice %15 {offsets = [0, 48], sizes = [8, 8], strides = [1, 1]} : vector<8x64xf32> to vector<8x8xf32>
    %151 = arith.truncf %150 : vector<8x8xf32> to vector<8x8xbf16>
    %152 = vector.extract_strided_slice %20 {offsets = [0, 48], sizes = [8, 8], strides = [1, 1]} : vector<8x64xf32> to vector<8x8xf32>
    %153 = arith.truncf %152 : vector<8x8xf32> to vector<8x8xbf16>
    %cst_60 = arith.constant dense<0.000000e+00> : vector<8x8xf32>
    %154 = tpu.matmul %149, %151, %cst_60 {dimension_numbers = #tpu.dot_dimension_numbers<[1], [1], [0], [0], [0, 0, 1, 0], [], []>} : vector<8x8xbf16>, vector<8x8xbf16>, vector<8x8xf32> -> vector<8x8xf32>
    %cst_61 = arith.constant 0.353553385 : f32
    %155 = vector.broadcast %cst_61 : f32 to vector<8x8xf32>
    %156 = arith.mulf %154, %155 : vector<8x8xf32>
    %157 = math.exp %156 : vector<8x8xf32>
    %cst_62 = arith.constant dense<0.000000e+00> : vector<8xf32>
    %158 = vector.multi_reduction <add>, %157, %cst_62 [1] : vector<8x8xf32> to vector<8xf32>
    %159 = vector.shape_cast %158 : vector<8xf32> to vector<8x1xf32>
    %160 = tpu.reciprocal %159 {approx = true} : vector<8x1xf32> -> vector<8x1xf32>
    %161 = vector.broadcast %160 : vector<8x1xf32> to vector<8x8xf32>
    %162 = arith.mulf %157, %161 : vector<8x8xf32>
    %163 = arith.truncf %162 : vector<8x8xf32> to vector<8x8xbf16>
    %cst_63 = arith.constant dense<0.000000e+00> : vector<8x8xf32>
    %164 = tpu.matmul %163, %153, %cst_63 {dimension_numbers = #tpu.dot_dimension_numbers<[1], [0], [0], [1], [0, 0, 1, 1], [], []>} : vector<8x8xbf16>, vector<8x8xbf16>, vector<8x8xf32> -> vector<8x8xf32>
    %165 = arith.truncf %164 : vector<8x8xf32> to vector<8x8xbf16>
    %c48 = arith.constant 48 : index
    %c0_64 = arith.constant 0 : index
    %166 = vector.load %arg10[%c48, %c0_64] : memref<64x32xbf16, #tpu.memory_space<vmem>>, vector<8x32xbf16>
    %cst_65 = arith.constant dense<0.000000e+00> : vector<8x32xf32>
    %167 = tpu.matmul %165, %166, %cst_65 {dimension_numbers = #tpu.dot_dimension_numbers<[1], [0], [0], [1], [0, 0, 1, 1], [], []>} : vector<8x8xbf16>, vector<8x32xbf16>, vector<8x32xf32> -> vector<8x32xf32>
    %168 = arith.addf %147, %167 : vector<8x32xf32>
    %169 = vector.extract_strided_slice %10 {offsets = [0, 56], sizes = [8, 8], strides = [1, 1]} : vector<8x64xf32> to vector<8x8xf32>
    %170 = arith.truncf %169 : vector<8x8xf32> to vector<8x8xbf16>
    %171 = vector.extract_strided_slice %15 {offsets = [0, 56], sizes = [8, 8], strides = [1, 1]} : vector<8x64xf32> to vector<8x8xf32>
    %172 = arith.truncf %171 : vector<8x8xf32> to vector<8x8xbf16>
    %173 = vector.extract_strided_slice %20 {offsets = [0, 56], sizes = [8, 8], strides = [1, 1]} : vector<8x64xf32> to vector<8x8xf32>
    %174 = arith.truncf %173 : vector<8x8xf32> to vector<8x8xbf16>
    %cst_66 = arith.constant dense<0.000000e+00> : vector<8x8xf32>
    %175 = tpu.matmul %170, %172, %cst_66 {dimension_numbers = #tpu.dot_dimension_numbers<[1], [1], [0], [0], [0, 0, 1, 0], [], []>} : vector<8x8xbf16>, vector<8x8xbf16>, vector<8x8xf32> -> vector<8x8xf32>
    %cst_67 = arith.constant 0.353553385 : f32
    %176 = vector.broadcast %cst_67 : f32 to vector<8x8xf32>
    %177 = arith.mulf %175, %176 : vector<8x8xf32>
    %178 = math.exp %177 : vector<8x8xf32>
    %cst_68 = arith.constant dense<0.000000e+00> : vector<8xf32>
    %179 = vector.multi_reduction <add>, %178, %cst_68 [1] : vector<8x8xf32> to vector<8xf32>
    %180 = vector.shape_cast %179 : vector<8xf32> to vector<8x1xf32>
    %181 = tpu.reciprocal %180 {approx = true} : vector<8x1xf32> -> vector<8x1xf32>
    %182 = vector.broadcast %181 : vector<8x1xf32> to vector<8x8xf32>
    %183 = arith.mulf %178, %182 : vector<8x8xf32>
    %184 = arith.truncf %183 : vector<8x8xf32> to vector<8x8xbf16>
    %cst_69 = arith.constant dense<0.000000e+00> : vector<8x8xf32>
    %185 = tpu.matmul %184, %174, %cst_69 {dimension_numbers = #tpu.dot_dimension_numbers<[1], [0], [0], [1], [0, 0, 1, 1], [], []>} : vector<8x8xbf16>, vector<8x8xbf16>, vector<8x8xf32> -> vector<8x8xf32>
    %186 = arith.truncf %185 : vector<8x8xf32> to vector<8x8xbf16>
    %c56 = arith.constant 56 : index
    %c0_70 = arith.constant 0 : index
    %187 = vector.load %arg10[%c56, %c0_70] : memref<64x32xbf16, #tpu.memory_space<vmem>>, vector<8x32xbf16>
    %cst_71 = arith.constant dense<0.000000e+00> : vector<8x32xf32>
    %188 = tpu.matmul %186, %187, %cst_71 {dimension_numbers = #tpu.dot_dimension_numbers<[1], [0], [0], [1], [0, 0, 1, 1], [], []>} : vector<8x8xbf16>, vector<8x32xbf16>, vector<8x32xf32> -> vector<8x32xf32>
    %189 = arith.addf %168, %188 : vector<8x32xf32>
    %c0_72 = arith.constant 0 : index
    %c0_73 = arith.constant 0 : index
    %190 = vector.load %arg11[%c0_72, %c0_73] : memref<1x32xf32, #tpu.memory_space<vmem>>, vector<1x32xf32>
    %191 = vector.broadcast %190 : vector<1x32xf32> to vector<8x32xf32>
    %192 = arith.addf %189, %191 : vector<8x32xf32>
    %c0_74 = arith.constant 0 : index
    %c0_75 = arith.constant 0 : index
    %c0_76 = arith.constant 0 : index
    %193 = vector.load %arg12[%c0_74, %c0_75, %c0_76] : memref<1x8x32xf32, #tpu.memory_space<vmem>>, vector<1x8x32xf32>
    %194 = vector.shape_cast %193 : vector<1x8x32xf32> to vector<8x32xf32>
    %195 = vector.shape_cast %192 : vector<8x32xf32> to vector<1x8x32xf32>
    tpu.vector_store %arg12[%c0_74, %c0_75, %c0_76], %195 {strides = array<i32>} : memref<1x8x32xf32, #tpu.memory_space<vmem>>, vector<1x8x32xf32>,
    return
  }
  func.func @transform_0(%arg0: i32) -> (i32, i32, i32) {
    %c0_i32 = arith.constant 0 : i32
    %c0_i32_0 = arith.constant 0 : i32
    %c0_i32_1 = arith.constant 0 : i32
    return %arg0, %c0_i32, %c0_i32_0 : i32, i32, i32
  }
  func.func @transform_1(%arg0: i32) -> (i32, i32, i32) {
    %c0_i32 = arith.constant 0 : i32
    %c0_i32_0 = arith.constant 0 : i32
    %c0_i32_1 = arith.constant 0 : i32
    return %arg0, %c0_i32, %c0_i32_0 : i32, i32, i32
  }
  func.func @transform_2(%arg0: i32) -> (i32, i32, i32) {
    %c0_i32 = arith.constant 0 : i32
    %c0_i32_0 = arith.constant 0 : i32
    %c0_i32_1 = arith.constant 0 : i32
    return %arg0, %c0_i32, %c0_i32_0 : i32, i32, i32
  }
  func.func @transform_3(%arg0: i32) -> (i32, i32) {
    %c0_i32 = arith.constant 0 : i32
    %c0_i32_0 = arith.constant 0 : i32
    %c0_i32_1 = arith.constant 0 : i32
    return %c0_i32, %c0_i32_0 : i32, i32
  }
  func.func @transform_4(%arg0: i32) -> (i32, i32) {
    %c0_i32 = arith.constant 0 : i32
    %c0_i32_0 = arith.constant 0 : i32
    %c0_i32_1 = arith.constant 0 : i32
    return %c0_i32, %c0_i32_0 : i32, i32
  }
  func.func @transform_5(%arg0: i32) -> (i32, i32) {
    %c0_i32 = arith.constant 0 : i32
    %c0_i32_0 = arith.constant 0 : i32
    %c0_i32_1 = arith.constant 0 : i32
    return %c0_i32, %c0_i32_0 : i32, i32
  }
  func.func @transform_6(%arg0: i32) -> (i32, i32) {
    %c0_i32 = arith.constant 0 : i32
    %c0_i32_0 = arith.constant 0 : i32
    %c0_i32_1 = arith.constant 0 : i32
    return %c0_i32, %c0_i32_0 : i32, i32
  }
  func.func @transform_7(%arg0: i32) -> (i32, i32) {
    %c0_i32 = arith.constant 0 : i32
    %c0_i32_0 = arith.constant 0 : i32
    %c0_i32_1 = arith.constant 0 : i32
    return %c0_i32, %c0_i32_0 : i32, i32
  }
  func.func @transform_8(%arg0: i32) -> (i32, i32) {
    %c0_i32 = arith.constant 0 : i32
    %c0_i32_0 = arith.constant 0 : i32
    %c0_i32_1 = arith.constant 0 : i32
    return %c0_i32, %c0_i32_0 : i32, i32
  }
  func.func @transform_9(%arg0: i32) -> (i32, i32) {
    %c0_i32 = arith.constant 0 : i32
    %c0_i32_0 = arith.constant 0 : i32
    %c0_i32_1 = arith.constant 0 : i32
    return %c0_i32, %c0_i32_0 : i32, i32
  }
  func.func @transform_10(%arg0: i32) -> (i32, i32) {
    %c0_i32 = arith.constant 0 : i32
    %c0_i32_0 = arith.constant 0 : i32
    %c0_i32_1 = arith.constant 0 : i32
    return %c0_i32, %c0_i32_0 : i32, i32
  }
  func.func @transform_11(%arg0: i32) -> (i32, i32, i32) {
    %c0_i32 = arith.constant 0 : i32
    %c0_i32_0 = arith.constant 0 : i32
    %c0_i32_1 = arith.constant 0 : i32
    return %arg0, %c0_i32, %c0_i32_0 : i32, i32, i32
  }
}

</mosaic_0001>

<bundles_post_ra>
// kernel: tpu_custom_call.1
= control target key start
LH: loop header
LB: loop body
LE: loop exit
PB: predicated region body
PF: predicated region fallthrough
CT: control target
= control target key end

     0   :  { %s3156_s0 = inlined_call_operand.hbm [shape: bf16[2,8,32], index: 0, kind: input, shape index: {}]   ;;  %s3157_s1 = inlined_call_operand.hbm [shape: bf16[2,8,32], index: 1, kind: input, shape index: {}]   ;;  %s3158_s2 = inlined_call_operand.hbm [shape: bf16[2,8,32], index: 2, kind: input, shape index: {}]   ;;  %s3159_s3 = inlined_call_operand.vmem [shape: bf16[32,64], index: 3, kind: input, shape index: {}]   ;;  %s3160_s4 = inlined_call_operand.vmem [shape: f32[1,64], index: 4, kind: input, shape index: {}]   ;;  %s3161_s5 = inlined_call_operand.vmem [shape: bf16[32,64], index: 5, kind: input, shape index: {}]   ;;  %s3162_s6 = inlined_call_operand.vmem [shape: f32[1,64], index: 6, kind: input, shape index: {}]   ;;  %s3163_s7 = inlined_call_operand.vmem [shape: bf16[32,64], index: 7, kind: input, shape index: {}]   ;;  %s3164_s8 = inlined_call_operand.vmem [shape: f32[1,64], index: 8, kind: input, shape index: {}]   ;;  %s3165_s9 = inlined_call_operand.vmem [shape: bf16[64,32], index: 9, kind: input, shape index: {}]   ;;  %s3166_s10 = inlined_call_operand.vmem [shape: f32[1,32], index: 10, kind: input, shape index: {}]   ;;  %s3167_s11 = inlined_call_operand.hbm [shape: f32[2,8,32], index: 11, kind: output, shape index: {}]  }
   0x1   :  { %3182 = sst [smem:[#allocation19_spill]] %s3157_s1 }
   0x2   :  { %3183 = sst [smem:[#allocation20_spill]] %s3167_s11 }
   0x3   :  { %16 = vsyncpa [#allocation3], 0 }
   0x4   :  { %18 = vsyncpa [#allocation3 + $0x1], 0 }
   0x5   :  { %19 = vsyncpa [#allocation6], 0 }
   0x6   :  { %21 = vsyncpa [#allocation6 + $0x1], 0 }
   0x7   :  { %22 = vsyncpa [#allocation4], 0 }
   0x8   :  { %24 = vsyncpa [#allocation4 + $0x1], 0  ;;  %s2678_s17 = smov 0   ;;  %s2680_s18 = smov 0  }
   0x9   :  { %s2682_s19 = smov 0   ;;  %s2684_s20 = smov 0  }
   0xa LB: > { %3184 = sst [smem:[#allocation12_spill]] %s2591_s17  ;;  %s2699_s21 = sadd.s32 4294967295, %s2603_s20   ;;  %s2603_s20 = sphi %s2684_s20, %s3212_s20   ;;  %s2599_s19 = sphi %s2682_s19, %s3214_s19   ;;  %s2595_s18 = sphi %s2680_s18, %s3216_s18   ;;  %s2591_s17 = sphi %s2678_s17, %s3215_s17  }
   0xb   : > { %3185 = sst [smem:[#allocation13_spill]] %s2599_s19  ;;  %s2060_s22 = sadd.s32 4294967294, %s2603_s20  }
   0xc   : > { %3186 = sst [smem:[#allocation14_spill]] %s2603_s20  ;;  %s2703_s23 = sadd.s32 1, %s2603_s20  }
   0xd   : > { %3187 = sst [smem:[#allocation15_spill]] %s2703_s23  ;;  %s37_s24 = sadd.s32 1, %s2599_s19 }
   0xe   : > { %s34_s25 = ssub.s32 %s2603_s20, %s2703_s23  ;;  %p44_p0 = scmp.ne.s32.totalorder %s2599_s19, %s2595_s18 }
   0xf   : > { %p35_p1 = scmp.eq.s32.totalorder %s34_s25, 0  ;;  %p45_p2 = scmp.eq.s32.totalorder %s2603_s20, 0 }
  0x10   : > { %p50_p3 = scmp.ne.s32.totalorder %s2595_s18, %s2591_s17  ;;  %p51_p4 = scmp.eq.s32.totalorder %s2699_s21, 0 }
  0x11   : > { %s2715_s26 = scalar_select %p35_p1, %s2599_s19, %s37_s24  }
  0x12   : > { %p46_p5 = por %p45_p2, %p44_p0  ;;  %p2717_p6 = por %p51_p4, %p50_p3 }
  0x13   : > { %3188 = sst [smem:[#allocation16_spill]] %s2715_s26  ;;  %p294_p7 = scmp.eq.s32.totalorder %s2699_s21, 1 }
  0x14   : > { %s3189_s27 = scalar_select %p2717_p6, 1, 0 }
  0x15   : > { %p300_p8 = scmp.eq.s32.totalorder %s2060_s22, 1  ;;  %p2362_p10 = scmp.lt.s32.totalorder %s2603_s20, 2 }
  0x16   : > { %p2724_p11 = por %p294_p7, %p44_p0  ;;  %s3168_s30 = sand.u32 1, %s2599_s19  }
  0x17   : > { %p2728_p12 = por %p300_p8, %p50_p3  ;;  %s2734_s12 = sshll.u32 %s2603_s20, 6 }
  0x18   : > { %s3190_s28 = scalar_select %p2724_p11, 1, 0 }
  0x19   : > { %s3192_s29 = scalar_select %p2728_p12, 1, 0 }
  0x1a   : > { %3191 = sst [smem:[#allocation17_spill]] %s3190_s28  ;;  %s2738_s13 = sshll.u32 %s3168_s30, 2 }
  0x1b   : > { %3193 = sst [smem:[#allocation18_spill]] %s3192_s29  ;;  %p2740_p13 = pnand %p2362_p10, %p46_p5 }
  0x1c   : > { %s362_s15 = sand.u32 1, %s2603_s20   ;;  %s3195_s1 = sld [smem:[#allocation19_spill]] }
  0x1d   : > { %s3194_s14 = scalar_select %p2740_p13, 1, 0 }
  0x1e   : > { %s366_s25 = scalar_lea.vmem [#allocation5], %s2738_s13  ;;  %s2755_s30 = scalar_lea.sflag [#allocation6], %s362_s15 }
  0x1f   : > { %s373_s26 = sshll.u32 %s366_s25, 4  ;;  %p2761_p2 = pneg %p2740_p13  ;;  %s2752_s26 = int_to_ptr.vmem [resolvable:$true] %s373_s26 }
  0x22   : > { %s2749_s24 = scalar_lea.hbm %s3195_s1, %s2734_s12  ;;  %s2448_s25 = scalar_lea.hbm %s3195_s1, 128 }
  0x23   : > { %s2443_s23 = scalar_lea.hbm %s2749_s24, 64  ;;  %p2449_p5 = scmp.lt.u32.totalorder %s2749_s24, %s3195_s1 }
  0x24   : > { %p2444_p1 = scmp.ne.s32.totalorder %s2749_s24, %s2443_s23  ;;  %p2450_p7 = scmp.lt.u32.totalorder %s2448_s25, %s2443_s23 }
  0x25   : > { %p2452_p10 = scmp.lt.u32.totalorder %s2443_s23, %s2749_s24 }
  0x26   : > { %p2446_p3 = pnand %p2761_p2, %p2444_p1  ;;  %p2451_p8 = por %p2450_p7, %p2449_p5 }
  0x28   : > { %p2447_p4 = pneg %p2446_p3  ;;  %p2453_p9 = por %p2452_p10, %p2451_p8 }
  0x2a   : > { %p2454_p0 = pnand %p2453_p9, %p2447_p4 }
  0x2c   : > { %2457 = shalt.err (!%p2454_p0)
}
  0x2d   : > { %s2458_s15 = scalar_lea.vmem %s2752_s26, 64  ;;  %s2605_s16 = smov [#allocation5]  }
  0x2e   : > { %p2459_p1 = scmp.ne.s32.totalorder %s2752_s26, %s2458_s15  ;;  %s2463_s22 = sshll.u32 %s2605_s16, 4  ;;  %s2464_s22 = int_to_ptr.vmem [resolvable:$false] %s2463_s22 }
  0x2f   : > { %s2465_s11 = scalar_lea.vmem %s2464_s22, 128  ;;  %p2466_p11 = scmp.lt.s32.totalorder %s2752_s26, %s2464_s22 }
  0x30   : > { %p2461_p3 = pnand %p2459_p1, %p2761_p2  ;;  %p2467_p6 = scmp.lt.s32.totalorder %s2465_s11, %s2458_s15 }
  0x32   : > { %p2462_p12 = pneg %p2461_p3  ;;  %p2468_p5 = por %p2467_p6, %p2466_p11 }
  0x34   : > { %p2469_p7 = pnand %p2468_p5, %p2462_p12 }
  0x36   : > { %2472 = shalt.err (!%p2469_p7)
}
  0x37   : > { %2354 = dma.hbm_to_vmem [thread:$0]  (!%p2740_p13), %s2749_s24, 64, %s2752_s26, %s2755_s30  }
  0x38   : > { %p396_p9 = scmp.lt.s32.totalorder %s2603_s20, 3  ;;  %s2790_s25 = scalar_lea.hbm %s3156_s0, %s2734_s12 }
  0x39   : > { %p3197_p6 = scmp.ge.s32.totalorder %s2603_s20, 1  ;;  %s348_s16 = scalar_lea.vmem [#allocation2], %s2738_s13 }
  0x3a   : > { %s355_s22 = sshll.u32 %s348_s16, 4  ;;  %s3199_s11 = sand.u32 1, %s2599_s19   ;;  %s356_s22 = int_to_ptr.vmem [resolvable:$true] %s355_s22 }
  0x3b   : > { %p2794_p11 = pnand %p3197_p6, %p396_p9  ;;  %s345_s26 = scalar_lea.sflag [#allocation3], %s3199_s11 }
  0x3c   : > { %s2473_s24 = scalar_lea.hbm %s2790_s25, 64  ;;  %s2478_s1 = scalar_lea.hbm %s3156_s0, 128 }
  0x3d   : > { %s3198_s15 = scalar_select %p2794_p11, 1, 0 }
  0x3e   : > { %p2474_p12 = scmp.ne.s32.totalorder %s2790_s25, %s2473_s24  ;;  %p2479_p8 = scmp.lt.u32.totalorder %s2790_s25, %s3156_s0 }
  0x3f   : > { %p2480_p10 = scmp.lt.u32.totalorder %s2478_s1, %s2473_s24  ;;  %p2482_p3 = scmp.lt.u32.totalorder %s2473_s24, %s2790_s25 }
  0x40   : > { %p2476_p0 = pnand %p2474_p12, %p2761_p2 }
  0x41   : > { %p2481_p1 = por %p2480_p10, %p2479_p8 }
  0x42   : > { %p2477_p4 = pneg %p2476_p0 }
  0x43   : > { %p2483_p5 = por %p2482_p3, %p2481_p1 }
  0x45   : > { %p2484_p7 = pnand %p2483_p5, %p2477_p4 }
  0x47   : > { %2487 = shalt.err (!%p2484_p7)
}
  0x48   : > { %s2488_s16 = scalar_lea.vmem %s356_s22, 64  ;;  %s2606_s11 = smov [#allocation2]  }
  0x49   : > { %p2489_p9 = scmp.ne.s32.totalorder %s356_s22, %s2488_s16  ;;  %s2493_s19 = sshll.u32 %s2606_s11, 4  ;;  %s2494_s19 = int_to_ptr.vmem [resolvable:$false] %s2493_s19 }
  0x4a   : > { %s2495_s17 = scalar_lea.vmem %s2494_s19, 128  ;;  %p2496_p0 = scmp.lt.s32.totalorder %s356_s22, %s2494_s19 }
  0x4b   : > { %p2491_p6 = pnand %p2489_p9, %p2761_p2  ;;  %p2497_p11 = scmp.lt.s32.totalorder %s2495_s17, %s2488_s16 }
  0x4d   : > { %p2492_p12 = pneg %p2491_p6  ;;  %p2498_p13 = por %p2497_p11, %p2496_p0 }
  0x4f   : > { %p2499_p8 = pnand %p2498_p13, %p2492_p12 }
  0x51   : > { %2502 = shalt.err (!%p2499_p8)
}
  0x52   : > { %p3200_p10 = scmp.ne.s32.totalorder %s3194_s14, 0  ;;  %s2822_s28 = scalar_lea.hbm %s3158_s2, %s2734_s12 }
  0x53   : > { %s384_s19 = scalar_lea.vmem [#allocation7], %s2738_s13  ;;  %s2503_s23 = scalar_lea.hbm %s2822_s28, 64 }
  0x54   : > { %2351 = dma.hbm_to_vmem [thread:$0]  (!%p3200_p10), %s2790_s25, 64, %s356_s22, %s345_s26  }
  0x55   : > { %s391_s24 = sshll.u32 %s384_s19, 4  ;;  %p2504_p13 = scmp.ne.s32.totalorder %s2822_s28, %s2503_s23  ;;  %s392_s24 = int_to_ptr.vmem [resolvable:$true] %s391_s24 }
  0x56   : > { %s2508_s25 = scalar_lea.hbm %s3158_s2, 128  ;;  %p2509_p1 = scmp.lt.u32.totalorder %s2822_s28, %s3158_s2 }
  0x57   : > { %p2506_p11 = pnand %p2504_p13, %p2761_p2  ;;  %p2510_p3 = scmp.lt.u32.totalorder %s2508_s25, %s2503_s23 }
  0x58   : > { %p2512_p7 = scmp.lt.u32.totalorder %s2503_s23, %s2822_s28 }
  0x59   : > { %p2507_p4 = pneg %p2506_p11  ;;  %p2511_p5 = por %p2510_p3, %p2509_p1 }
  0x5b   : > { %p2513_p9 = por %p2512_p7, %p2511_p5 }
  0x5d   : > { %p2514_p6 = pnand %p2513_p9, %p2507_p4 }
  0x5f   : > { %2517 = shalt.err (!%p2514_p6)
}
  0x60   : > { %s2518_s12 = scalar_lea.vmem %s392_s24, 64  ;;  %s2607_s13 = smov [#allocation7]  }
  0x61   : > { %p2519_p12 = scmp.ne.s32.totalorder %s392_s24, %s2518_s12  ;;  %s2523_s17 = sshll.u32 %s2607_s13, 4  ;;  %s2524_s17 = int_to_ptr.vmem [resolvable:$false] %s2523_s17 }
  0x62   : > { %s2525_s1 = scalar_lea.vmem %s2524_s17, 128  ;;  %p2526_p13 = scmp.lt.s32.totalorder %s392_s24, %s2524_s17 }
  0x63   : > { %p2521_p0 = pnand %p2519_p12, %p2761_p2  ;;  %p2527_p11 = scmp.lt.s32.totalorder %s2525_s1, %s2518_s12 }
  0x65   : > { %p2522_p8 = pneg %p2521_p0  ;;  %p2528_p10 = por %p2527_p11, %p2526_p13 }
  0x67   : > { %p2529_p1 = pnand %p2528_p10, %p2522_p8 }
  0x69   : > { %2532 = shalt.err (!%p2529_p1)
}
  0x6a   : > { %p3201_p3 = scmp.ne.s32.totalorder %s3194_s14, 0  ;;  %p3202_p4 = scmp.ne.s32.totalorder %s3198_s15, 0 }
  0x6b   : > { %s2846_s29 = sand.u32 (!%p3202_p4), 1, %s2595_s18   ;;  %p3203_p2 = scmp.ne.s32.totalorder (!%p3202_p4), %s3189_s27, 0 }
  0x6c   : > { %2357 = dma.hbm_to_vmem [thread:$0]  (!%p3201_p3), %s2822_s28, 64, %s392_s24, %s2755_s30  }
  0x6d   : > { %400 = sbr.rel (%p3202_p4) target bundleno = 3870 (0xf1e), region = 64  ;;  %s2849_s20 = sshll.u32 (!%p3202_p4), %s2846_s29, 2 }
  0x6e   : > { %s403_s19 = scalar_lea.sflag (!%p3202_p4), [#allocation3], %s2846_s29  ;;  %s406_s23 = scalar_lea.vmem (!%p3202_p4), [#allocation2], %s2849_s20 }
  0x74   : > { %2578 = dma.done.wait (%p3203_p2), %s403_s19, 64  }
  0x75   : > { %2580 = vsyncadd (%p3203_p2), %s403_s19, 4294967232  ;;  %s411_s30 = sand.u32 1, %s2699_s21   ;;  %s415_s15 = scalar_lea.vmem [#allocation5], %s2849_s20 }
  0x76   : > { %s412_s14 = scalar_lea.sflag [#allocation6], %s411_s30 }
  0x77   : > { %2582 = dma.done.wait (%p3203_p2), %s412_s14, 128  }
  0x78   : > { %2584 = vsyncadd (%p3203_p2), %s412_s14, 4294967168  ;;  %v2608_v0 = vmov 0.0   ;;  %vm2609_vm0 = vmmov 0   ;;  %v2405_v1 = vld [vmem:[%s3159_s3] sm:$0xff]   ;;  %v2407_v3 = vld [vmem:[%s3159_s3 + $0x8] sm:$0xff]   ;;  %vm500_vm1 = vcmask 261120  }
  0x79   : > { %2172 = vmatprep.subr.bf16.mxu0 %v2608_v0  ;;  %2180 = vmatprep.subr.bf16.mxu1 %v2608_v0  ;;  %v2406_v2 = vld [vmem:[%s3161_s5] sm:$0xff]   ;;  %v2408_v4 = vld [vmem:[%s3161_s5 + $0x8] sm:$0xff]   ;;  %s424_s19 = scalar_lea.vmem [#allocation7], %s2849_s20  ;;  %vm679_vm2 = vcmask 64512   ;;  %s2610_s20 = smov 120   ;;  %vm738_vm3 = vcmask 1043456  }
  0x7a   : > { %2176 = vmatprep.mubr.msk.bf16.mxu0 %vm2609_vm0, %v2608_v0  ;;  %2184 = vmatprep.mubr.msk.bf16.mxu1 %vm2609_vm0, %v2608_v0  ;;  %v474_v5 = vld [vmem:[%s406_s23] sm:$0xf]  ;;  %v475_v7 = vld [vmem:[%s415_s15] sm:$0xf]  ;;  %v476_v9 = vld [vmem:[%s424_s19] sm:$0xf] }
  0x7b   : > { %2173 = vmatpush3.bf16.msra.mxu0 %v2405_v1  ;;  %2181 = vmatpush3.bf16.msra.mxu1 %v2406_v2  ;;  %v2409_v6 = vld [vmem:[%s3163_s7] sm:$0xff]   ;;  %v2410_v8 = vld [vmem:[%s3163_s7 + $0x8] sm:$0xff]   ;;  %s2611_s16 = smov 112   ;;  %s2612_s11 = smov 104  }
  0x7c   : > { %2174 = vmatprep.subr.bf16.mxu0 %v2608_v0  ;;  %2182 = vmatprep.subr.bf16.mxu1 %v2608_v0  ;;  %v2078_v10 = vld [vmem:[%s3162_s6] ss:$0 sm:$0xff]  ;;  %v895_v58 = vld [vmem:[%s3165_s9 + $0x4] sm:$0xf]  ;;  %s2613_s12 = smov 96   ;;  %s2614_s1 = smov 88  }
  0x7d   : > { %v2074_v11 = vld [vmem:[%s3160_s4] ss:$0 sm:$0xff]  ;;  %v900_v59 = vsel %vm738_vm3, %v895_v58, 0  ;;  %s2615_s30 = smov 80   ;;  %s2073_s22 = sshll.u32 %s2846_s29, 3 }
  0x7e   : > { %v2082_v25 = vld [vmem:[%s3164_s8] ss:$0 sm:$0xff]  ;;  %s3204_s13 = sld [smem:[#allocation17_spill]]  ;;  %s2112_s17 = sshll.u32 %s2699_s21, 7 }
  0x7f   : > { %2175 = vmatpush3.bf16.msra.mxu0 %v2407_v3  ;;  %2183 = vmatpush3.bf16.msra.mxu1 %v2408_v4  ;;  %v783_v62 = vld [vmem:[%s3165_s9] sm:$0xf]  ;;  %s3205_s14 = sld [smem:[#allocation20_spill]]  ;;  %s1934_s21 = scalar_lea.sflag [#allocation4], %s2846_s29 }
  0x80   : > { %2188 = vmatprep.subr.bf16.mxu0 %v2608_v0  ;;  %2196 = vmatprep.subr.bf16.mxu1 %v2608_v0  ;;  %v946_v2 = vsel %vm738_vm3, %v783_v62, 0  ;;  %v1252_v62 = vld [vmem:[%s3165_s9 + $0xc] sm:$0xf]  ;;  %s2617_s28 = smov [#allocation8]  }
  0x81   : > { %s2537_s24 = sshll.u32 %s2617_s28, 4  ;;  %s2538_s24 = int_to_ptr.vmem [resolvable:$false] %s2537_s24 }
  0x82   : > { %2177 = vmatmul.mubr.msk.bf16.vlgmr.msra.gmra.mrb[0].mxu0 %vm500_vm1, %v474_v5  ;;  %2185 = vmatmul.mubr.msk.bf16.vlgmr.msra.gmra.mrb[0].mxu1 %vm500_vm1, %v475_v7 }
  0x83   : > { %2189 = vmatpush3.bf16.msra.mxu0 %v2409_v6  ;;  %2192 = vmatprep.mubr.msk.bf16.mxu0 %vm2609_vm0, %v2608_v0 }
  0x84   : > { %2190 = vmatprep.subr.bf16.mxu0 %v2608_v0  ;;  %2198 = vmatprep.mubr.msk.bf16.mxu1 %vm2609_vm0, %v2608_v0  ;;  %p3206_p5 = scmp.ne.s32.totalorder %s3204_s13, 0 }
  0x85   : > { %s3111_s15 = scalar_lea.hbm %s3205_s14, %s2112_s17 }
  0x87   : > { %2191 = vmatpush3.bf16.msra.mxu0 %v2410_v8 }
  0x88   : > { %2202 = vmatprep.subr.bf16.mxu0 %v2608_v0 }
  0x8a   : > { %2193 = vmatmul.mubr.msk.bf16.vlgmr.msra.gmra.mrb[4].mxu0 %vm500_vm1, %v476_v9 }
  0x8b   : > { %2204 = vmatprep.mubr.msk.bf16.mxu0 %vm2609_vm0, %v2608_v0 }
 0x155   : > { %v538_v12 = vpop.f32.mrb[0].mxu0  ;;  %v604_v13 = vpop.f32.mrb[0].mxu1 }
 0x156   : > { %v2178_v14 = vpop.f32.mrb[1].mxu0  ;;  %v605_v15 = vadd.f32 %v2078_v10, %v604_v13  ;;  %v2186_v16 = vpop.f32.mrb[1].mxu1  ;;  %v539_v17 = vadd.f32 %v2074_v11, %v538_v12 }
 0x157   : > { %v541_v18 = vpop.f32.mrb[2].mxu0  ;;  %v607_v19 = vpop.f32.mrb[2].mxu1 }
 0x158   : > { %v2179_v20 = vpop.f32.mrb[3].mxu0  ;;  %v2909_v21 = vpack.c.bf16 %v605_v15, %v605_v15  ;;  %v2187_v22 = vpop.f32.mrb[3].mxu1  ;;  %v2911_v23 = vpack.c.bf16 %v539_v17, %v539_v17 }
 0x15a   : > { %788 = vrot.lane.b32.xlu0 %v2909_v21, %s2610_s20  ;;  %v684_v24 = vsel %vm679_vm2, %v2909_v21, 0 }
 0x15b   : > { %2197 = vmatpush3.bf16.xpose.msra.mxu1 %v684_v24 }
 0x15c   : > { %2208 = vmatprep.subr.bf16.mxu1 %v2608_v0 }
 0x15d   : > { %v670_v26 = vpop.f32.mrb[4].mxu0 }
 0x15e   : > { %v671_v27 = vadd.f32 %v2082_v25, %v670_v26  ;;  %v2194_v28 = vpop.f32.mrb[5].mxu0  ;;  %785 = vrot.lane.b32.xlu0 %v2911_v23, %s2610_s20 }
 0x15f   : > { %v673_v29 = vpop.f32.mrb[6].mxu0 }
 0x160   : > { %v2921_v30 = vpack.c.bf16 %v671_v27, %v671_v27  ;;  %v2195_v31 = vpop.f32.mrb[7].mxu0 }
 0x162   : > { %2199 = vmatmul.mubr.msk.bf16.vlgmr.msra.gmra.mrb[4].mxu1 %vm679_vm2, %v2911_v23  ;;  %846 = vrot.lane.b32.xlu0 %v2921_v30, %s2610_s20  ;;  %v740_v43 = vsel %vm738_vm3, %v2921_v30, 0  ;;  %s2616_s20 = smov 72  }
 0x163   : > { %2210 = vmatprep.mubr.msk.bf16.mxu1 %vm2609_vm0, %v2608_v0  ;;  %2203 = vmatpush3.bf16.msra.mxu0 %v740_v43 }
 0x164   : > { %2214 = vmatprep.subr.bf16.mxu0 %v2608_v0 }
 0x166   : > { %988 = vrot.lane.b32.xlu0 %v2911_v23, %s2611_s16 }
 0x1cc   : > { %v789_v32 = vpop.permute.xlu0 %788 }
 0x1cd   : > { %v794_v33 = vsel %vm679_vm2, %v789_v32, 0 }
 0x1ce   : > { %2209 = vmatpush3.bf16.xpose.msra.mxu1 %v794_v33 }
 0x1cf   : > { %2220 = vmatprep.subr.bf16.mxu1 %v2608_v0 }
 0x1d0   : > { %v786_v34 = vpop.permute.xlu0 %785 }
 0x1d4   : > { %v847_v55 = vpop.permute.xlu0 %846 }
 0x1d5   : > { %2211 = vmatmul.mubr.msk.bf16.vlgmr.msra.gmra.mrb[8].mxu1 %vm679_vm2, %v786_v34  ;;  %v852_v56 = vsel %vm738_vm3, %v847_v55, 0 }
 0x1d6   : > { %2222 = vmatprep.mubr.msk.bf16.mxu1 %vm2609_vm0, %v2608_v0  ;;  %2221 = vmatpush3.bf16.msra.mxu1 %v900_v59 }
 0x1d7   : > { %2232 = vmatprep.subr.bf16.mxu1 %v2608_v0 }
 0x1d8   : > { %v989_v17 = vpop.permute.xlu0 %988 }
 0x235   : > { %v720_v35 = vpop.f32.mrb[4].mxu1 }
 0x236   : > { %v726_v36 = vmul.f32 0.35355338, %v720_v35  ;;  %v2200_v37 = vpop.f32.mrb[5].mxu1 }
 0x237   : > { %v723_v38 = vpop.f32.mrb[6].mxu1 }
 0x238   : > { %v727_v39 = vmul.f32 1.442695, %v726_v36  ;;  %v2201_v40 = vpop.f32.mrb[7].mxu1  ;;  %v1096_v38 = vld [vmem:[%s3165_s9 + $0x8] sm:$0xf] }
 0x23a   : > { %2411 = vpow2.f32 %v727_v39  ;;  %v1101_v39 = vsel %vm738_vm3, %v1096_v38, 0 }
 0x244   : > { %v2412_v41 = vpop.eup %2411 }
 0x245   : > { %v729_v42 = vsel %vm679_vm2, %v2412_v41, 0.0 }
 0x246   : > { %730 = vadd.xlane.f32.xlu1 %v729_v42 }
 0x2a8   : > { %v830_v44 = vpop.f32.mrb[8].mxu1 }
 0x2a9   : > { %v836_v45 = vmul.f32 0.35355338, %v830_v44  ;;  %v2212_v46 = vpop.f32.mrb[9].mxu1 }
 0x2aa   : > { %v833_v47 = vpop.f32.mrb[10].mxu1 }
 0x2ab   : > { %v837_v48 = vmul.f32 1.442695, %v836_v45  ;;  %v2213_v49 = vpop.f32.mrb[11].mxu1 }
 0x2ad   : > { %2413 = vpow2.f32 %v837_v48 }
 0x2b7   : > { %v2414_v50 = vpop.eup %2413 }
 0x2b8   : > { %v839_v51 = vsel %vm679_vm2, %v2414_v50, 0.0 }
 0x2b9   : > { %840 = vadd.xlane.f32.xlu1 %v839_v51 }
 0x2ca   : > { %990 = vrot.lane.b32.xlu1 %v2909_v21, %s2611_s16 }
 0x2ce   : > { %1047 = vrot.lane.b32.xlu1 %v2921_v30, %s2611_s16  ;;  %s2539_s16 = scalar_lea.vmem %s2538_s24, 256 }
 0x2d2   : > { %1146 = vrot.lane.b32.xlu1 %v2909_v21, %s2612_s11 }
 0x2d3   : > { %v731_v52 = vpop.xlane.xlu1 %730 }
 0x2d4   : > { %2415 = vrcp.f32 %v731_v52 }
 0x2d6   : > { %1144 = vrot.lane.b32.xlu1 %v2911_v23, %s2612_s11 }
 0x2de   : > { %v2416_v53 = vpop.eup %2415 }
 0x2df   : > { %v733_v54 = vmul.f32 %v2416_v53, %v2412_v41 }
 0x2e1   : > { %v734_v57 = vpack.c.bf16 %v733_v54, %v733_v54 }
 0x2e3   : > { %2205 = vmatmul.mubr.msk.bf16.vlgmr.msra.gmra.mrb[8].mxu0 %vm679_vm2, %v734_v57 }
 0x2e4   : > { %2215 = vmatpush3.bf16.msra.mxu0 %v852_v56  ;;  %2216 = vmatprep.mubr.msk.bf16.mxu0 %vm2609_vm0, %v2608_v0 }
 0x2e5   : > { %2226 = vmatprep.subr.bf16.mxu0 %v2608_v0 }
 0x346   : > { %v841_v60 = vpop.xlane.xlu1 %840 }
 0x347   : > { %2417 = vrcp.f32 %v841_v60 }
 0x34a   : > { %v991_v3 = vpop.permute.xlu1 %990 }
 0x34b   : > { %v996_v15 = vsel %vm679_vm2, %v991_v3, 0 }
 0x34e   : > { %v1048_v7 = vpop.permute.xlu1 %1047 }
 0x34f   : > { %v1053_v9 = vsel %vm738_vm3, %v1048_v7, 0 }
 0x351   : > { %v2418_v61 = vpop.eup %2417 }
 0x352   : > { %v843_v63 = vmul.f32 %v2418_v61, %v2414_v50  ;;  %v1147_v43 = vpop.permute.xlu1 %1146 }
 0x353   : > { %v1152_v45 = vsel %vm679_vm2, %v1147_v43, 0 }
 0x354   : > { %v844_v1 = vpack.c.bf16 %v843_v63, %v843_v63  ;;  %v1257_v63 = vsel %vm738_vm3, %v1252_v62, 0 }
 0x356   : > { %2217 = vmatmul.mubr.msk.bf16.vlgmr.msra.gmra.mrb[12].mxu0 %vm679_vm2, %v844_v1  ;;  %v1145_v46 = vpop.permute.xlu1 %1144 }
 0x357   : > { %2227 = vmatpush3.bf16.msra.mxu0 %v946_v2  ;;  %2228 = vmatprep.mubr.msk.bf16.mxu0 %vm2609_vm0, %v2608_v0 }
 0x358   : > { %2238 = vmatprep.subr.bf16.mxu0 %v2608_v0 }
 0x3b6   : > { %v776_v4 = vpop.f32.mrb[8].mxu0 }
 0x3b7   : > { %v782_v5 = vpack.c.bf16 %v776_v4, %v776_v4  ;;  %v2206_v6 = vpop.f32.mrb[9].mxu0 }
 0x3b8   : > { %v779_v8 = vpop.f32.mrb[10].mxu0 }
 0x3b9   : > { %v2207_v10 = vpop.f32.mrb[11].mxu0  ;;  %2229 = vmatmul.mubr.msk.bf16.vlgmr.msra.gmra.mrb[16].mxu0 %vm679_vm2, %v782_v5 }
 0x3ba   : > { %2239 = vmatpush3.bf16.msra.mxu0 %v1053_v9  ;;  %2240 = vmatprep.mubr.msk.bf16.mxu0 %vm2609_vm0, %v2608_v0 }
 0x3bb   : > { %2250 = vmatprep.subr.bf16.mxu0 %v2608_v0 }
 0x429   : > { %v888_v11 = vpop.f32.mrb[12].mxu0 }
 0x42a   : > { %v894_v12 = vpack.c.bf16 %v888_v11, %v888_v11  ;;  %v2218_v13 = vpop.f32.mrb[13].mxu0 }
 0x42b   : > { %v891_v14 = vpop.f32.mrb[14].mxu0 }
 0x42c   : > { %v2219_v16 = vpop.f32.mrb[15].mxu0  ;;  %2223 = vmatmul.mubr.msk.bf16.vlgmr.msra.gmra.mrb[12].mxu1 %vm679_vm2, %v894_v12 }
 0x42d   : > { %2233 = vmatpush3.bf16.xpose.msra.mxu1 %v996_v15  ;;  %2234 = vmatprep.mubr.msk.bf16.mxu1 %vm2609_vm0, %v2608_v0 }
 0x42e   : > { %2244 = vmatprep.subr.bf16.mxu1 %v2608_v0 }
 0x434   : > { %2235 = vmatmul.mubr.msk.bf16.vlgmr.msra.gmra.mrb[16].mxu1 %vm679_vm2, %v989_v17 }
 0x435   : > { %2246 = vmatprep.mubr.msk.bf16.mxu1 %vm2609_vm0, %v2608_v0  ;;  %2245 = vmatpush3.bf16.msra.mxu1 %v1101_v39 }
 0x436   : > { %2256 = vmatprep.subr.bf16.mxu1 %v2608_v0 }
 0x48c   : > { %v982_v18 = vpop.f32.mrb[16].mxu0 }
 0x48d   : > { %v2230_v19 = vpop.f32.mrb[17].mxu0 }
 0x48e   : > { %v985_v20 = vpop.f32.mrb[18].mxu0 }
 0x48f   : > { %v2231_v22 = vpop.f32.mrb[19].mxu0 }
 0x4ff   : > { %v936_v24 = vpop.f32.mrb[12].mxu1 }
 0x500   : > { %v2979_v25 = vadd.f32 %v982_v18, %v936_v24  ;;  %v2224_v26 = vpop.f32.mrb[13].mxu1 }
 0x501   : > { %v939_v27 = vpop.f32.mrb[14].mxu1 }
 0x502   : > { %v2225_v28 = vpop.f32.mrb[15].mxu1 }
 0x507   : > { %v1032_v29 = vpop.f32.mrb[16].mxu1 }
 0x508   : > { %v1038_v31 = vmul.f32 0.35355338, %v1032_v29  ;;  %v2236_v32 = vpop.f32.mrb[17].mxu1 }
 0x509   : > { %v1035_v33 = vpop.f32.mrb[18].mxu1 }
 0x50a   : > { %v1039_v34 = vmul.f32 1.442695, %v1038_v31  ;;  %v2237_v35 = vpop.f32.mrb[19].mxu1  ;;  %v1408_v31 = vld [vmem:[%s3165_s9 + $0x10] sm:$0xf] }
 0x50b   : > { %v1413_v32 = vsel %vm738_vm3, %v1408_v31, 0 }
 0x50c   : > { %2419 = vpow2.f32 %v1039_v34 }
 0x516   : > { %v2420_v36 = vpop.eup %2419 }
 0x517   : > { %v1041_v37 = vsel %vm679_vm2, %v2420_v36, 0.0 }
 0x518   : > { %1042 = vadd.xlane.f32.xlu0 %v1041_v37 }
 0x52e   : > { %1203 = vrot.lane.b32.xlu0 %v2921_v30, %s2612_s11 }
 0x532   : > { %1302 = vrot.lane.b32.xlu0 %v2909_v21, %s2613_s12 }
 0x536   : > { %1300 = vrot.lane.b32.xlu0 %v2911_v23, %s2613_s12 }
 0x53a   : > { %1359 = vrot.lane.b32.xlu0 %v2921_v30, %s2613_s12 }
 0x53e   : > { %1456 = vrot.lane.b32.xlu0 %v2911_v23, %s2614_s1 }
 0x5a5   : > { %v1043_v40 = vpop.xlane.xlu0 %1042 }
 0x5a6   : > { %2421 = vrcp.f32 %v1043_v40 }
 0x5a9   : > { %v1204_v47 = vpop.permute.xlu0 %1203 }
 0x5aa   : > { %v1209_v52 = vsel %vm738_vm3, %v1204_v47, 0 }
 0x5ad   : > { %v1303_v4 = vpop.permute.xlu0 %1302 }
 0x5ae   : > { %v1308_v6 = vsel %vm679_vm2, %v1303_v4, 0 }
 0x5b0   : > { %v2422_v41 = vpop.eup %2421 }
 0x5b1   : > { %v1045_v42 = vmul.f32 %v2422_v41, %v2420_v36  ;;  %v1301_v7 = vpop.permute.xlu0 %1300 }
 0x5b3   : > { %v1046_v44 = vpack.c.bf16 %v1045_v42, %v1045_v42 }
 0x5b5   : > { %2241 = vmatmul.mubr.msk.bf16.vlgmr.msra.gmra.mrb[20].mxu0 %vm679_vm2, %v1046_v44  ;;  %v1360_v13 = vpop.permute.xlu0 %1359 }
 0x5b6   : > { %2251 = vmatpush3.bf16.xpose.msra.mxu0 %v1152_v45  ;;  %2252 = vmatprep.mubr.msk.bf16.mxu0 %vm2609_vm0, %v2608_v0  ;;  %v1365_v18 = vsel %vm738_vm3, %v1360_v13, 0 }
 0x5b7   : > { %2262 = vmatprep.subr.bf16.mxu0 %v2608_v0 }
 0x5b9   : > { %v1457_v39 = vpop.permute.xlu0 %1456 }
 0x5bd   : > { %2253 = vmatmul.mubr.msk.bf16.vlgmr.msra.gmra.mrb[24].mxu0 %vm679_vm2, %v1145_v46 }
 0x5be   : > { %2264 = vmatprep.mubr.msk.bf16.mxu0 %vm2609_vm0, %v2608_v0  ;;  %2263 = vmatpush3.bf16.msra.mxu0 %v1257_v63 }
 0x5bf   : > { %2274 = vmatprep.subr.bf16.mxu0 %v2608_v0 }
 0x688   : > { %v1089_v48 = vpop.f32.mrb[20].mxu0 }
 0x689   : > { %v1095_v49 = vpack.c.bf16 %v1089_v48, %v1089_v48  ;;  %v2242_v50 = vpop.f32.mrb[21].mxu0 }
 0x68a   : > { %v1092_v51 = vpop.f32.mrb[22].mxu0 }
 0x68b   : > { %v2243_v53 = vpop.f32.mrb[23].mxu0  ;;  %2247 = vmatmul.mubr.msk.bf16.vlgmr.msra.gmra.mrb[20].mxu1 %vm679_vm2, %v1095_v49 }
 0x68c   : > { %2257 = vmatpush3.bf16.msra.mxu1 %v1209_v52  ;;  %2258 = vmatprep.mubr.msk.bf16.mxu1 %vm2609_vm0, %v2608_v0 }
 0x68d   : > { %2268 = vmatprep.subr.bf16.mxu1 %v2608_v0 }
 0x690   : > { %v1188_v54 = vpop.f32.mrb[24].mxu0 }
 0x691   : > { %v1194_v55 = vmul.f32 0.35355338, %v1188_v54  ;;  %v2254_v56 = vpop.f32.mrb[25].mxu0 }
 0x692   : > { %v1191_v57 = vpop.f32.mrb[26].mxu0 }
 0x693   : > { %v1195_v58 = vmul.f32 1.442695, %v1194_v55  ;;  %v2255_v59 = vpop.f32.mrb[27].mxu0 }
 0x695   : > { %2423 = vpow2.f32 %v1195_v58 }
 0x69f   : > { %v2424_v60 = vpop.eup %2423 }
 0x6a0   : > { %v1197_v61 = vsel %vm679_vm2, %v2424_v60, 0.0 }
 0x6a1   : > { %1198 = vadd.xlane.f32.xlu1 %v1197_v61 }
 0x72e   : > { %v1199_v1 = vpop.xlane.xlu1 %1198 }
 0x72f   : > { %2425 = vrcp.f32 %v1199_v1 }
 0x739   : > { %v2426_v2 = vpop.eup %2425 }
 0x73a   : > { %v1201_v3 = vmul.f32 %v2426_v2, %v2424_v60  ;;  %v1564_v60 = vld [vmem:[%s3165_s9 + $0x14] sm:$0xf] }
 0x73b   : > { %v1569_v61 = vsel %vm738_vm3, %v1564_v60, 0 }
 0x73c   : > { %v1202_v5 = vpack.c.bf16 %v1201_v3, %v1201_v3 }
 0x73e   : > { %2259 = vmatmul.mubr.msk.bf16.vlgmr.msra.gmra.mrb[24].mxu1 %vm679_vm2, %v1202_v5 }
 0x73f   : > { %2269 = vmatpush3.bf16.xpose.msra.mxu1 %v1308_v6  ;;  %2270 = vmatprep.mubr.msk.bf16.mxu1 %vm2609_vm0, %v2608_v0 }
 0x740   : > { %2280 = vmatprep.subr.bf16.mxu1 %v2608_v0 }
 0x746   : > { %2271 = vmatmul.mubr.msk.bf16.vlgmr.msra.gmra.mrb[28].mxu1 %vm679_vm2, %v1301_v7 }
 0x747   : > { %2282 = vmatprep.mubr.msk.bf16.mxu1 %vm2609_vm0, %v2608_v0  ;;  %2281 = vmatpush3.bf16.msra.mxu1 %v1413_v32 }
 0x748   : > { %2292 = vmatprep.subr.bf16.mxu1 %v2608_v0 }
 0x75e   : > { %v1137_v8 = vpop.f32.mrb[20].mxu1 }
 0x75f   : > { %v1143_v9 = vadd.f32 %v1137_v8, %v2979_v25  ;;  %v2248_v10 = vpop.f32.mrb[21].mxu1 }
 0x760   : > { %v1140_v11 = vpop.f32.mrb[22].mxu1 }
 0x761   : > { %v2249_v12 = vpop.f32.mrb[23].mxu1 }
 0x811   : > { %v1245_v14 = vpop.f32.mrb[24].mxu1 }
 0x812   : > { %v1251_v15 = vpack.c.bf16 %v1245_v14, %v1245_v14  ;;  %v2260_v16 = vpop.f32.mrb[25].mxu1 }
 0x813   : > { %v1248_v17 = vpop.f32.mrb[26].mxu1 }
 0x814   : > { %v2261_v19 = vpop.f32.mrb[27].mxu1  ;;  %2265 = vmatmul.mubr.msk.bf16.vlgmr.msra.gmra.mrb[28].mxu0 %vm679_vm2, %v1251_v15 }
 0x815   : > { %2275 = vmatpush3.bf16.msra.mxu0 %v1365_v18  ;;  %2276 = vmatprep.mubr.msk.bf16.mxu0 %vm2609_vm0, %v2608_v0 }
 0x816   : > { %2286 = vmatprep.subr.bf16.mxu0 %v2608_v0 }
 0x819   : > { %v1344_v20 = vpop.f32.mrb[28].mxu1 }
 0x81a   : > { %v1350_v22 = vmul.f32 0.35355338, %v1344_v20  ;;  %v2272_v24 = vpop.f32.mrb[29].mxu1 }
 0x81b   : > { %v1347_v25 = vpop.f32.mrb[30].mxu1 }
 0x81c   : > { %v1351_v26 = vmul.f32 1.442695, %v1350_v22  ;;  %v2273_v27 = vpop.f32.mrb[31].mxu1  ;;  %v1720_v25 = vld [vmem:[%s3165_s9 + $0x18] sm:$0xf] }
 0x81e   : > { %2427 = vpow2.f32 %v1351_v26  ;;  %v1725_v26 = vsel %vm738_vm3, %v1720_v25, 0 }
 0x828   : > { %v2428_v28 = vpop.eup %2427 }
 0x829   : > { %v1353_v29 = vsel %vm679_vm2, %v2428_v28, 0.0 }
 0x82a   : > { %1354 = vadd.xlane.f32.xlu1 %v1353_v29 }
 0x83b   : > { %1458 = vrot.lane.b32.xlu1 %v2909_v21, %s2614_s1 }
 0x83f   : > { %1515 = vrot.lane.b32.xlu1 %v2921_v30, %s2614_s1  ;;  %s472_s1 = scalar_lea.vmem [#allocation8], %s2073_s22 }
 0x840   : > { %s1947_s19 = sshll.u32 %s472_s1, 4  ;;  %s3113_s19 = int_to_ptr.vmem [resolvable:$true] %s1947_s19 }
 0x841   : > { %p2540_p6 = scmp.lt.s32.totalorder %s3113_s19, %s2538_s24 }
 0x843   : > { %1614 = vrot.lane.b32.xlu1 %v2909_v21, %s2615_s30 }
 0x847   : > { %1612 = vrot.lane.b32.xlu1 %v2911_v23, %s2615_s30 }
 0x8b7   : > { %v1355_v33 = vpop.xlane.xlu1 %1354 }
 0x8b8   : > { %2429 = vrcp.f32 %v1355_v33 }
 0x8bb   : > { %v1459_v36 = vpop.permute.xlu1 %1458 }
 0x8bc   : > { %v1464_v38 = vsel %vm679_vm2, %v1459_v36, 0 }
 0x8bf   : > { %v1516_v45 = vpop.permute.xlu1 %1515 }
 0x8c0   : > { %v1521_v50 = vsel %vm738_vm3, %v1516_v45, 0 }
 0x8c2   : > { %v2430_v34 = vpop.eup %2429 }
 0x8c3   : > { %v1357_v35 = vmul.f32 %v2430_v34, %v2428_v28  ;;  %v1615_v2 = vpop.permute.xlu1 %1614 }
 0x8c5   : > { %v1358_v37 = vpack.c.bf16 %v1357_v35, %v1357_v35 }
 0x8c7   : > { %2277 = vmatmul.mubr.msk.bf16.vlgmr.msra.gmra.mrb[32].mxu0 %vm679_vm2, %v1358_v37 }
 0x8c8   : > { %2287 = vmatpush3.bf16.xpose.msra.mxu0 %v1464_v38  ;;  %2288 = vmatprep.mubr.msk.bf16.mxu0 %vm2609_vm0, %v2608_v0 }
 0x8c9   : > { %2298 = vmatprep.subr.bf16.mxu0 %v2608_v0 }
 0x8cf   : > { %2289 = vmatmul.mubr.msk.bf16.vlgmr.msra.gmra.mrb[36].mxu0 %vm679_vm2, %v1457_v39 }
 0x8d0   : > { %2300 = vmatprep.mubr.msk.bf16.mxu0 %vm2609_vm0, %v2608_v0  ;;  %2299 = vmatpush3.bf16.msra.mxu0 %v1569_v61 }
 0x8d1   : > { %2310 = vmatprep.subr.bf16.mxu0 %v2608_v0 }
 0x8e7   : > { %v1293_v40 = vpop.f32.mrb[28].mxu0 }
 0x8e8   : > { %v1299_v41 = vadd.f32 %v1293_v40, %v1143_v9  ;;  %v2266_v42 = vpop.f32.mrb[29].mxu0 }
 0x8e9   : > { %v1296_v43 = vpop.f32.mrb[30].mxu0 }
 0x8ea   : > { %v2267_v44 = vpop.f32.mrb[31].mxu0 }
 0x99a   : > { %v1401_v46 = vpop.f32.mrb[32].mxu0 }
 0x99b   : > { %v1407_v47 = vpack.c.bf16 %v1401_v46, %v1401_v46  ;;  %v2278_v48 = vpop.f32.mrb[33].mxu0 }
 0x99c   : > { %v1404_v49 = vpop.f32.mrb[34].mxu0 }
 0x99d   : > { %v2279_v51 = vpop.f32.mrb[35].mxu0  ;;  %2283 = vmatmul.mubr.msk.bf16.vlgmr.msra.gmra.mrb[32].mxu1 %vm679_vm2, %v1407_v47 }
 0x99e   : > { %2293 = vmatpush3.bf16.msra.mxu1 %v1521_v50  ;;  %2294 = vmatprep.mubr.msk.bf16.mxu1 %vm2609_vm0, %v2608_v0 }
 0x99f   : > { %2304 = vmatprep.subr.bf16.mxu1 %v2608_v0 }
 0x9a2   : > { %v1500_v52 = vpop.f32.mrb[36].mxu0 }
 0x9a3   : > { %v1506_v53 = vmul.f32 0.35355338, %v1500_v52  ;;  %v2290_v54 = vpop.f32.mrb[37].mxu0 }
 0x9a4   : > { %v1503_v55 = vpop.f32.mrb[38].mxu0 }
 0x9a5   : > { %v1507_v56 = vmul.f32 1.442695, %v1506_v53  ;;  %v2291_v57 = vpop.f32.mrb[39].mxu0  ;;  %v1876_v55 = vld [vmem:[%s3165_s9 + $0x1c] sm:$0xf] }
 0x9a7   : > { %2431 = vpow2.f32 %v1507_v56  ;;  %v1881_v56 = vsel %vm738_vm3, %v1876_v55, 0 }
 0x9b1   : > { %v2432_v58 = vpop.eup %2431 }
 0x9b2   : > { %v1509_v59 = vsel %vm679_vm2, %v2432_v58, 0.0 }
 0x9b3   : > { %1510 = vadd.xlane.f32.xlu0 %v1509_v59 }
 0x9c9   : > { %1671 = vrot.lane.b32.xlu0 %v2921_v30, %s2615_s30 }
 0x9cd   : > { %1770 = vrot.lane.b32.xlu0 %v2909_v21, %s2616_s20  ;;  %v1620_v21 = vsel %vm679_vm2, %v1615_v2, 0 }
 0x9d1   : > { %1768 = vrot.lane.b32.xlu0 %v2911_v23, %s2616_s20  ;;  %v1613_v23 = vpop.permute.xlu1 %1612 }
 0x9d5   : > { %1827 = vrot.lane.b32.xlu0 %v2921_v30, %s2616_s20  ;;  %s2533_s20 = scalar_lea.vmem %s3113_s19, 128 }
 0x9d6   : > { %p2534_p10 = scmp.ne.s32.totalorder %s3113_s19, %s2533_s20  ;;  %p2541_p12 = scmp.lt.s32.totalorder %s2539_s16, %s2533_s20 }
 0x9d8   : > { %p2535_p7 = pnand %p2534_p10, %p3206_p5  ;;  %p2542_p0 = por %p2541_p12, %p2540_p6 }
 0x9da   : > { %p2536_p9 = pneg %p2535_p7 }
 0x9dc   : > { %p2543_p8 = pnand %p2542_p0, %p2536_p9 }
 0xa40   : > { %v1511_v62 = vpop.xlane.xlu0 %1510 }
 0xa41   : > { %2433 = vrcp.f32 %v1511_v62 }
 0xa44   : > { %v1672_v8 = vpop.permute.xlu0 %1671 }
 0xa45   : > { %v1677_v13 = vsel %vm738_vm3, %v1672_v8, 0 }
 0xa48   : > { %v1771_v31 = vpop.permute.xlu0 %1770 }
 0xa49   : > { %v1776_v33 = vsel %vm679_vm2, %v1771_v31, 0 }
 0xa4b   : > { %v2434_v63 = vpop.eup %2433 }
 0xa4c   : > { %v1513_v1 = vmul.f32 %v2434_v63, %v2432_v58  ;;  %v1769_v34 = vpop.permute.xlu0 %1768 }
 0xa4e   : > { %v1514_v3 = vpack.c.bf16 %v1513_v1, %v1513_v1 }
 0xa50   : > { %2295 = vmatmul.mubr.msk.bf16.vlgmr.msra.gmra.mrb[36].mxu1 %vm679_vm2, %v1514_v3  ;;  %v1828_v40 = vpop.permute.xlu0 %1827 }
 0xa51   : > { %2305 = vmatpush3.bf16.xpose.msra.mxu1 %v1620_v21  ;;  %2306 = vmatprep.mubr.msk.bf16.mxu1 %vm2609_vm0, %v2608_v0  ;;  %v1833_v45 = vsel %vm738_vm3, %v1828_v40, 0 }
 0xa52   : > { %2316 = vmatprep.subr.bf16.mxu1 %v2608_v0 }
 0xa58   : > { %2307 = vmatmul.mubr.msk.bf16.vlgmr.msra.gmra.mrb[40].mxu1 %vm679_vm2, %v1613_v23 }
 0xa59   : > { %2318 = vmatprep.mubr.msk.bf16.mxu1 %vm2609_vm0, %v2608_v0  ;;  %2317 = vmatpush3.bf16.msra.mxu1 %v1725_v26 }
 0xa5a   : > { %2328 = vmatprep.subr.bf16.mxu1 %v2608_v0 }
 0xa70   : > { %v1449_v30 = vpop.f32.mrb[32].mxu1 }
 0xa71   : > { %v1455_v4 = vadd.f32 %v1449_v30, %v1299_v41  ;;  %v2284_v5 = vpop.f32.mrb[33].mxu1 }
 0xa72   : > { %v1452_v6 = vpop.f32.mrb[34].mxu1  ;;  %v2110_v5 = vld [vmem:[%s3166_s10] ss:$0 sm:$0xff] }
 0xa73   : > { %v2285_v7 = vpop.f32.mrb[35].mxu1 }
 0xb23   : > { %v1557_v9 = vpop.f32.mrb[36].mxu1 }
 0xb24   : > { %v1563_v10 = vpack.c.bf16 %v1557_v9, %v1557_v9  ;;  %v2296_v11 = vpop.f32.mrb[37].mxu1 }
 0xb25   : > { %v1560_v12 = vpop.f32.mrb[38].mxu1 }
 0xb26   : > { %v2297_v14 = vpop.f32.mrb[39].mxu1  ;;  %2301 = vmatmul.mubr.msk.bf16.vlgmr.msra.gmra.mrb[40].mxu0 %vm679_vm2, %v1563_v10 }
 0xb27   : > { %2311 = vmatpush3.bf16.msra.mxu0 %v1677_v13  ;;  %2312 = vmatprep.mubr.msk.bf16.mxu0 %vm2609_vm0, %v2608_v0 }
 0xb28   : > { %2322 = vmatprep.subr.bf16.mxu0 %v2608_v0 }
 0xb2b   : > { %v1656_v15 = vpop.f32.mrb[40].mxu1 }
 0xb2c   : > { %v1662_v16 = vmul.f32 0.35355338, %v1656_v15  ;;  %v2308_v17 = vpop.f32.mrb[41].mxu1 }
 0xb2d   : > { %v1659_v18 = vpop.f32.mrb[42].mxu1 }
 0xb2e   : > { %v1663_v19 = vmul.f32 1.442695, %v1662_v16  ;;  %v2309_v20 = vpop.f32.mrb[43].mxu1 }
 0xb30   : > { %2435 = vpow2.f32 %v1663_v19 }
 0xb3a   : > { %v2436_v22 = vpop.eup %2435 }
 0xb3b   : > { %v1665_v24 = vsel %vm679_vm2, %v2436_v22, 0.0 }
 0xb3c   : > { %1666 = vadd.xlane.f32.xlu1 %v1665_v24 }
 0xbc9   : > { %v1667_v27 = vpop.xlane.xlu1 %1666 }
 0xbca   : > { %2437 = vrcp.f32 %v1667_v27 }
 0xbd4   : > { %v2438_v28 = vpop.eup %2437 }
 0xbd5   : > { %v1669_v29 = vmul.f32 %v2438_v28, %v2436_v22 }
 0xbd7   : > { %v1670_v32 = vpack.c.bf16 %v1669_v29, %v1669_v29 }
 0xbd9   : > { %2313 = vmatmul.mubr.msk.bf16.vlgmr.msra.gmra.mrb[44].mxu0 %vm679_vm2, %v1670_v32 }
 0xbda   : > { %2323 = vmatpush3.bf16.xpose.msra.mxu0 %v1776_v33  ;;  %2324 = vmatprep.mubr.msk.bf16.mxu0 %vm2609_vm0, %v2608_v0 }
 0xbdb   : > { %2334 = vmatprep.subr.bf16.mxu0 %v2608_v0 }
 0xbe1   : > { %2325 = vmatmul.mubr.msk.bf16.vlgmr.msra.gmra.mrb[48].mxu0 %vm679_vm2, %v1769_v34 }
 0xbe2   : > { %2336 = vmatprep.mubr.msk.bf16.mxu0 %vm2609_vm0, %v2608_v0  ;;  %2335 = vmatpush3.bf16.msra.mxu0 %v1881_v56 }
 0xbf9   : > { %v1605_v35 = vpop.f32.mrb[40].mxu0 }
 0xbfa   : > { %v1611_v36 = vadd.f32 %v1605_v35, %v1455_v4  ;;  %v2302_v37 = vpop.f32.mrb[41].mxu0 }
 0xbfb   : > { %v1608_v38 = vpop.f32.mrb[42].mxu0 }
 0xbfc   : > { %v2303_v39 = vpop.f32.mrb[43].mxu0 }
 0xcac   : > { %v1713_v41 = vpop.f32.mrb[44].mxu0 }
 0xcad   : > { %v1719_v42 = vpack.c.bf16 %v1713_v41, %v1713_v41  ;;  %v2314_v43 = vpop.f32.mrb[45].mxu0 }
 0xcae   : > { %v1716_v44 = vpop.f32.mrb[46].mxu0 }
 0xcaf   : > { %v2315_v46 = vpop.f32.mrb[47].mxu0  ;;  %2319 = vmatmul.mubr.msk.bf16.vlgmr.msra.gmra.mrb[44].mxu1 %vm679_vm2, %v1719_v42 }
 0xcb0   : > { %2329 = vmatpush3.bf16.msra.mxu1 %v1833_v45  ;;  %2330 = vmatprep.mubr.msk.bf16.mxu1 %vm2609_vm0, %v2608_v0 }
 0xcb4   : > { %v1812_v47 = vpop.f32.mrb[48].mxu0 }
 0xcb5   : > { %v1818_v48 = vmul.f32 0.35355338, %v1812_v47  ;;  %v2326_v49 = vpop.f32.mrb[49].mxu0 }
 0xcb6   : > { %v1815_v50 = vpop.f32.mrb[50].mxu0 }
 0xcb7   : > { %v1819_v51 = vmul.f32 1.442695, %v1818_v48  ;;  %v2327_v52 = vpop.f32.mrb[51].mxu0 }
 0xcb9   : > { %2439 = vpow2.f32 %v1819_v51 }
 0xcc3   : > { %v2440_v53 = vpop.eup %2439 }
 0xcc4   : > { %v1821_v54 = vsel %vm679_vm2, %v2440_v53, 0.0 }
 0xcc5   : > { %1822 = vadd.xlane.f32.xlu1 %v1821_v54 }
 0xd52   : > { %v1823_v57 = vpop.xlane.xlu1 %1822 }
 0xd53   : > { %2441 = vrcp.f32 %v1823_v57 }
 0xd5d   : > { %v2442_v0 = vpop.eup %2441 }
 0xd5e   : > { %v1825_v58 = vmul.f32 %v2442_v0, %v2440_v53 }
 0xd60   : > { %v1826_v59 = vpack.c.bf16 %v1825_v58, %v1825_v58 }
 0xd62   : > { %2331 = vmatmul.mubr.msk.bf16.vlgmr.msra.gmra.mrb[48].mxu1 %vm679_vm2, %v1826_v59 }
 0xd82   : > { %v1761_v60 = vpop.f32.mrb[44].mxu1 }
 0xd83   : > { %v1767_v61 = vadd.f32 %v1761_v60, %v1611_v36  ;;  %v2320_v62 = vpop.f32.mrb[45].mxu1 }
 0xd84   : > { %v1764_v63 = vpop.f32.mrb[46].mxu1 }
 0xd85   : > { %v2321_v1 = vpop.f32.mrb[47].mxu1 }
 0xe35   : > { %v1869_v2 = vpop.f32.mrb[48].mxu1 }
 0xe36   : > { %v1875_v3 = vpack.c.bf16 %v1869_v2, %v1869_v2  ;;  %v2332_v21 = vpop.f32.mrb[49].mxu1 }
 0xe37   : > { %v1872_v23 = vpop.f32.mrb[50].mxu1 }
 0xe38   : > { %v2333_v30 = vpop.f32.mrb[51].mxu1  ;;  %2337 = vmatmul.mubr.msk.bf16.vlgmr.msra.gmra.mrb[52].mxu0 %vm679_vm2, %v1875_v3 }
 0xf0b   : > { %v1917_v4 = vpop.f32.mrb[52].mxu0 }
 0xf0c   : > { %v1923_v6 = vadd.f32 %v1917_v4, %v1767_v61  ;;  %v2338_v7 = vpop.f32.mrb[53].mxu0 }
 0xf0d   : > { %v1920_v8 = vpop.f32.mrb[54].mxu0 }
 0xf0e   : > { %v1931_v9 = vadd.f32 %v2110_v5, %v1923_v6  ;;  %v2339_v10 = vpop.f32.mrb[55].mxu0 }
 0xf10   : > { %1932 = vst.msk [vmem:[%s472_s1] sm:$0xff] %vm500_vm1, %v1931_v9 }
 0xf11   : > { %2546 = shalt.err (!%p2543_p8)
}
 0xf12   : > { %s2547_s29 = scalar_lea.hbm %s3111_s15, 128  ;;  %s2551_s25 = scalar_lea.hbm %s3205_s14, 256 }
 0xf13   : > { %p2548_p13 = scmp.ne.s32.totalorder %s3111_s15, %s2547_s29  ;;  %p2552_p3 = scmp.lt.u32.totalorder %s3111_s15, %s3205_s14 }
 0xf14   : > { %p2553_p4 = scmp.lt.u32.totalorder %s2551_s25, %s2547_s29  ;;  %p2555_p10 = scmp.lt.u32.totalorder %s2547_s29, %s3111_s15 }
 0xf15   : > { %p2549_p11 = pnand %p2548_p13, %p3206_p5 }
 0xf16   : > { %p2554_p2 = por %p2553_p4, %p2552_p3 }
 0xf17   : > { %p2550_p1 = pneg %p2549_p11 }
 0xf18   : > { %p2556_p7 = por %p2555_p10, %p2554_p2 }
 0xf1a   : > { %p2557_p9 = pnand %p2556_p7, %p2550_p1 }
 0xf1c   : > { %2560 = shalt.err (!%p2557_p9)
}
 0xf1d   : > { %2346 = dma.vmem_to_hbm [thread:$0]  (%p3206_p5), %s3113_s19, 128, %s3111_s15, %s1934_s21  }
 0xf1e PF: > { %s3207_s12 = sld [smem:[#allocation12_spill]]  ;;  %s3208_s17 = sld [smem:[#allocation18_spill]] }
 0xf1f   : > { %s3209_s1 = sld [smem:[#allocation14_spill]] }
 0xf24   : > { %s1959_s23 = sand.u32 1, %s3207_s12   ;;  %p3210_p6 = scmp.ne.s32.totalorder %s3208_s17, 0 }
 0xf25   : > { %p3211_p12 = scmp.ge.s32.totalorder %s3209_s1, 2  ;;  %s1960_s30 = scalar_lea.sflag [#allocation4], %s1959_s23 }
 0xf27   : > { %p2359_p0 = pnand %p3211_p12, %p3210_p6 }
 0xf29   : > { %2586 = dma.done.wait (!%p2359_p0), %s1960_s30, 128  }
 0xf2a   : > { %2588 = vsyncadd (!%p2359_p0), %s1960_s30, 4294967168  ;;  %s3212_s20 = sld [smem:[#allocation15_spill]]  ;;  %s3213_s28 = sld [smem:[#allocation13_spill]] }
 0xf2b   : > { %s3214_s19 = sld [smem:[#allocation16_spill]]  ;;  %s3215_s17 = smov %s2595_s18 }
 0xf30   : > { %p27_p8 = scmp.ge.s32.totalorder %s3212_s20, 4   ;;  %s3216_s18 = smov %s3213_s28 }
 0xf32   :  { %29 = sbr.rel (!%p27_p8) target bundleno = 10 (0xa), region = 133 }
 0xf39   :  { %1965 = vsyncpa [#allocation3], 1 }
 0xf3a   :  { %1967 = vsyncpa [#allocation3 + $0x1], 1 }
 0xf3b   :  { %1968 = vsyncpa [#allocation6], 1 }
 0xf3c   :  { %1970 = vsyncpa [#allocation6 + $0x1], 1 }
 0xf3d   :  { %1971 = vsyncpa [#allocation4], 1 }
 0xf3e   :  { %1973 = vsyncpa [#allocation4 + $0x1], 1 }

</bundles_post_ra>
